<compile_context>
chip_gen: v5e
topology: v5e:2x2
jax: 0.10.0
libtpu: 0.0.40
codegen_flags: <defaults>
</compile_context>

<pallas_src>
import jax
import jax.numpy as jnp
from jax.experimental import pallas as pl
from jax.experimental.pallas import tpu as pltpu


def se_gate_mul_kernel(xse_ref, w_ref, b_ref, x_ref, o_ref):
    # xse: (1, Cin) ; w: (Cblk, Cin) ; b: (Cblk, 1) ; x: (Cblk, HW) ; o: (Cblk, HW)
    # 1x1 conv on a 1x1 spatial input == per-output-channel dot over Cin.
    # Cin = 30 -> keep it on the VPU/XLU (mul + lane reduce); MXU would be pure overhead.
    xse = xse_ref[...].astype(jnp.float32)
    w = w_ref[...].astype(jnp.float32)
    b = b_ref[...].astype(jnp.float32)
    s = jnp.sum(w * xse, axis=1, keepdims=True) + b          # (Cblk, 1), f32
    g = jax.nn.sigmoid(s)                                    # (Cblk, 1), EUP
    # Lane-broadcast the gate over the spatial (HW) axis and multiply in f32
    # (safe on v5e even with bf16 inputs), cast once on store.
    o_ref[...] = (g * x_ref[...].astype(jnp.float32)).astype(o_ref.dtype)


def se_gate_mul(x204, weight, bias, x201, *, c_block=360, alias_x201=False):
    """x204: (1, Cin, 1, 1), weight: (Cout, Cin, 1, 1), bias: (Cout,), x201: (1, Cout, H, W).

    Set alias_x201=True only if x201 is dead after this op (saves its HBM allocation).
    """
    _, cin, _, _ = x204.shape
    _, cout, h, w = x201.shape
    hw = h * w

    # Channel-blocked grid: rows must be a multiple of 8 (sublane tiling).  Prefer an
    # even grid (2) for the v7x two-TensorCore split; fall back to a single step.
    if cout % c_block != 0 or c_block % 8 != 0 or (cout // c_block) % 2 != 0:
        if cout % 2 == 0 and (cout // 2) % 8 == 0:
            c_block = cout // 2
        else:
            c_block = cout
    grid = (cout // c_block,)

    # All of these are free reshapes of contiguous data (no transposes).
    xse = x204.reshape(1, cin)        # (1, Cin)
    w2 = weight.reshape(cout, cin)    # (Cout, Cin)  -- native PyTorch conv-weight layout
    b2 = bias.reshape(cout, 1)        # (Cout, 1)
    xm = x201.reshape(cout, hw)       # (Cout, HW)   -- NCHW with N=1 is already (C, H*W)

    itemsize = jnp.dtype(x201.dtype).itemsize
    cost = pl.CostEstimate(
        flops=2 * cout * cin + cout * hw,
        transcendentals=cout,                                  # one sigmoid per channel
        bytes_accessed=(2 * cout * hw * itemsize               # x201 in + out
                        + cout * cin * 4 + cout * 4 + cin * 4),  # params + xse
    )

    out = pl.pallas_call(
        se_gate_mul_kernel,
        out_shape=jax.ShapeDtypeStruct((cout, hw), x201.dtype),
        grid=grid,
        in_specs=[
            pl.BlockSpec((1, cin), lambda i: (0, 0)),        # squeeze input, same every step
            pl.BlockSpec((c_block, cin), lambda i: (i, 0)),  # conv weight rows for this block
            pl.BlockSpec((c_block, 1), lambda i: (i, 0)),    # bias column for this block
            pl.BlockSpec((c_block, hw), lambda i: (i, 0)),   # x201 rows for this block
        ],
        out_specs=pl.BlockSpec((c_block, hw), lambda i: (i, 0)),
        compiler_params=pltpu.CompilerParams(dimension_semantics=("parallel",)),
        cost_estimate=cost,
        input_output_aliases=({3: 0} if alias_x201 else {}),
    )(xse, w2, b2, xm)

    # Free reshape back to the PyTorch NCHW output convention.
    return out.reshape(1, cout, h, w)


if __name__ == "__main__":
    key = jax.random.PRNGKey(0)
    k1, k2, k3, k4 = jax.random.split(key, 4)

    cin, cout, h, w = 30, 720, 14, 14
    x204 = jax.random.normal(k1, (1, cin, 1, 1), dtype=jnp.float32)
    x201 = jax.random.normal(k2, (1, cout, h, w), dtype=jnp.float32)
    # Deterministic synthetic parameters (Conv2d(30, 720, kernel_size=1)).
    weight = jax.random.normal(k3, (cout, cin, 1, 1), dtype=jnp.float32) * 0.1
    bias = jax.random.normal(k4, (cout,), dtype=jnp.float32) * 0.1

    fn = jax.jit(se_gate_mul)
    out = jax.block_until_ready(fn(x204, weight, bias, x201))

    # Pure-JAX reference check of the fused op (matches the PyTorch module).
    s_ref = weight.reshape(cout, cin) @ x204.reshape(cin) + bias
    ref = jax.nn.sigmoid(s_ref).reshape(1, cout, 1, 1) * x201
    assert out.shape == (1, cout, h, w)
    assert jnp.allclose(out, ref, atol=1e-5, rtol=1e-5)

    print("KERNEL_OK")
</pallas_src>

<mosaic_0001>
module attributes {stable_mosaic.version = 11 : i64} {
  func.func @se_gate_mul_kernel(%arg0: i32, %arg1: memref<1x30xf32, #tpu.memory_space<vmem>>, %arg2: memref<360x30xf32, #tpu.memory_space<vmem>>, %arg3: memref<360x1xf32, #tpu.memory_space<vmem>>, %arg4: memref<360x196xf32, #tpu.memory_space<vmem>>, %arg5: memref<360x196xf32, #tpu.memory_space<vmem>>) attributes {dimension_semantics = [#tpu.dimension_semantics<parallel>], iteration_bounds = array<i64: 2>, scalar_prefetch = 0 : i64, scratch_operands = 0 : i64, tpu.core_type = #tpu.core_type<tc>, window_params = [{pipeline_mode = #tpu.pipeline_mode<synchronous>, transform_indices = @transform_0, window_bounds = array<i64: 1, 30>}, {transform_indices = @transform_1, window_bounds = array<i64: 360, 30>}, {transform_indices = @transform_2, window_bounds = array<i64: 360, 1>}, {transform_indices = @transform_3, window_bounds = array<i64: 360, 196>}, {transform_indices = @transform_4, window_bounds = array<i64: 360, 196>}]} {
    %c0 = arith.constant 0 : index
    %c0_0 = arith.constant 0 : index
    %0 = vector.load %arg1[%c0, %c0_0] : memref<1x30xf32, #tpu.memory_space<vmem>>, vector<1x30xf32>
    %c0_1 = arith.constant 0 : index
    %c0_2 = arith.constant 0 : index
    %1 = vector.load %arg2[%c0_1, %c0_2] : memref<360x30xf32, #tpu.memory_space<vmem>>, vector<360x30xf32>
    %c0_3 = arith.constant 0 : index
    %c0_4 = arith.constant 0 : index
    %2 = vector.load %arg3[%c0_3, %c0_4] : memref<360x1xf32, #tpu.memory_space<vmem>>, vector<360x1xf32>
    %3 = vector.broadcast %0 : vector<1x30xf32> to vector<360x30xf32>
    %4 = arith.mulf %1, %3 : vector<360x30xf32>
    %cst = arith.constant dense<0.000000e+00> : vector<360xf32>
    %5 = vector.multi_reduction <add>, %4, %cst [1] : vector<360x30xf32> to vector<360xf32>
    %6 = vector.shape_cast %5 : vector<360xf32> to vector<360x1xf32>
    %7 = arith.addf %6, %2 : vector<360x1xf32>
    %8 = arith.negf %7 : vector<360x1xf32>
    %9 = math.exp %8 : vector<360x1xf32>
    %cst_5 = arith.constant 1.000000e+00 : f32
    %10 = vector.broadcast %cst_5 : f32 to vector<360x1xf32>
    %11 = arith.addf %10, %9 : vector<360x1xf32>
    %12 = arith.divf %10, %11 : vector<360x1xf32>
    %c0_6 = arith.constant 0 : index
    %c0_7 = arith.constant 0 : index
    %13 = vector.load %arg4[%c0_6, %c0_7] : memref<360x196xf32, #tpu.memory_space<vmem>>, vector<360x196xf32>
    %14 = vector.broadcast %12 : vector<360x1xf32> to vector<360x196xf32>
    %15 = arith.mulf %14, %13 : vector<360x196xf32>
    %c0_8 = arith.constant 0 : index
    %c0_9 = arith.constant 0 : index
    %16 = vector.load %arg5[%c0_8, %c0_9] : memref<360x196xf32, #tpu.memory_space<vmem>>, vector<360x196xf32>
    tpu.vector_store %arg5[%c0_8, %c0_9], %15 {strides = array<i32>} : memref<360x196xf32, #tpu.memory_space<vmem>>, vector<360x196xf32>,
    return
  }
  func.func @transform_0(%arg0: i32) -> (i32, i32) {
    %c0_i32 = arith.constant 0 : i32
    %c0_i32_0 = arith.constant 0 : i32
    %c0_i32_1 = arith.constant 0 : i32
    return %c0_i32, %c0_i32_0 : i32, i32
  }
  func.func @transform_1(%arg0: i32) -> (i32, i32) {
    %c0_i32 = arith.constant 0 : i32
    %c0_i32_0 = arith.constant 0 : i32
    return %arg0, %c0_i32 : i32, i32
  }
  func.func @transform_2(%arg0: i32) -> (i32, i32) {
    %c0_i32 = arith.constant 0 : i32
    %c0_i32_0 = arith.constant 0 : i32
    return %arg0, %c0_i32 : i32, i32
  }
  func.func @transform_3(%arg0: i32) -> (i32, i32) {
    %c0_i32 = arith.constant 0 : i32
    %c0_i32_0 = arith.constant 0 : i32
    return %arg0, %c0_i32 : i32, i32
  }
  func.func @transform_4(%arg0: i32) -> (i32, i32) {
    %c0_i32 = arith.constant 0 : i32
    %c0_i32_0 = arith.constant 0 : i32
    return %arg0, %c0_i32 : i32, i32
  }
}

</mosaic_0001>

<bundles_post_ra>
// kernel: se_gate_mul.1
= control target key start
LH: loop header
LB: loop body
LE: loop exit
PB: predicated region body
PF: predicated region fallthrough
CT: control target
= control target key end

     0   :  { %s2290_s15 = smov 0   ;;  %s3964_s0 = inlined_call_operand.vmem [shape: f32[1,30], index: 0, kind: input, shape index: {}]   ;;  %s3965_s1 = inlined_call_operand.vmem [shape: f32[720,30], index: 1, kind: input, shape index: {}]   ;;  %s3966_s2 = inlined_call_operand.vmem [shape: f32[720,1], index: 2, kind: input, shape index: {}]   ;;  %s3967_s3 = inlined_call_operand.vmem [shape: f32[720,196], index: 3, kind: input, shape index: {}]   ;;  %s3968_s4 = inlined_call_operand.vmem [shape: f32[720,196], index: 4, kind: output, shape index: {}]  }
   0x1 LB: > { %s2003_s16 = sadd.s32 4294967295, %s2262_s15   ;;  %p2007_p0 = scmp.ge.s32.totalorder %s2262_s15, 1  ;;  %s2262_s15 = sphi %s2290_s15, %s14_s15  }
   0x2   : > { %p186_p1 = scmp.lt.s32.totalorder %s2262_s15, 3 }
   0x4   : > { %p187_p2 = pnand %p2007_p0, %p186_p1 }
   0x5   : > { %s224_s17 = smul.u32 (!%p187_p2), 45, %s2003_s16 }
   0x6   : > { %190 = sbr.rel (%p187_p2) target bundleno = 461 (0x1cd), region = 36 }
   0x7   : > { %p225_p3 = scmp.lt.s32.totalorder (!%p187_p2), %s224_s17, 89 }
   0xb   : > { %s4086_s17 = smov (!%p225_p3, %s224_s17), 89  ;;  %v2303_v0 = vld [vmem:[%s3964_s0] ss:$0 sm:$0xff]  ;;  %vm389_vm0 = vcmask 244736  }
   0xc   : > { %s2008_s20 = sshll.u32 %s4086_s17, 3  ;;  %s2061_s27 = sshll.u32 %s4086_s17, 4 }
   0xd   : > { %s2311_s23 = scalar_lea.vmem %s3965_s1, %s2008_s20  ;;  %s2453_s26 = scalar_lea.vmem %s3966_s2, %s2008_s20 }
   0xe   : > { %v253_v1 = vld [vmem:[%s2311_s23 + $0x10] sm:$0xff]  ;;  %v251_v2 = vld [vmem:[%s2311_s23] sm:$0xff]  ;;  %v254_v7 = vld [vmem:[%s2311_s23 + $0x18] sm:$0xff]  ;;  %s3382_s30 = scalar_lea.vmem %s3967_s3, %s2061_s27  ;;  %s3431_s7 = scalar_lea.vmem %s3968_s4, %s2061_s27 }
   0xf   : > { %v255_v3 = vld [vmem:[%s2311_s23 + $0x20] sm:$0xff]  ;;  %v346_v4 = vmul.f32 %v2303_v0, %v253_v1  ;;  %v344_v5 = vmul.f32 %v2303_v0, %v251_v2  ;;  %v252_v8 = vld [vmem:[%s2311_s23 + $0x8] sm:$0xff]  ;;  %v347_v13 = vmul.f32 %v2303_v0, %v254_v7  ;;  %v258_v19 = vld [vmem:[%s2311_s23 + $0x38] sm:$0xff] }
  0x10   : > { %v348_v6 = vmul.f32 %v2303_v0, %v255_v3  ;;  %v256_v12 = vld [vmem:[%s2311_s23 + $0x28] sm:$0xff]  ;;  %v345_v14 = vmul.f32 %v2303_v0, %v252_v8  ;;  %v257_v20 = vld [vmem:[%s2311_s23 + $0x30] sm:$0xff]  ;;  %v259_v21 = vld [vmem:[%s2311_s23 + $0x40] sm:$0xff]  ;;  %v351_v22 = vmul.f32 %v2303_v0, %v258_v19 }
  0x11   : > { %v396_v9 = vsel %vm389_vm0, %v346_v4, 0.0  ;;  %v390_v10 = vsel %vm389_vm0, %v344_v5, 0.0  ;;  %v349_v15 = vmul.f32 %v2303_v0, %v256_v12  ;;  %v399_v16 = vsel %vm389_vm0, %v347_v13, 0.0  ;;  %v261_v28 = vld [vmem:[%s2311_s23 + $0x50] sm:$0xff]  ;;  %v260_v29 = vld [vmem:[%s2311_s23 + $0x48] sm:$0xff]  ;;  %v262_v30 = vld [vmem:[%s2311_s23 + $0x58] sm:$0xff] }
  0x12   : > { %v402_v11 = vsel %vm389_vm0, %v348_v6, 0.0  ;;  %397 = vadd.xlane.f32.xlu1 %v396_v9  ;;  %391 = vadd.xlane.f32.xlu0 %v390_v10  ;;  %v393_v17 = vsel %vm389_vm0, %v345_v14, 0.0  ;;  %v350_v23 = vmul.f32 %v2303_v0, %v257_v20  ;;  %v352_v24 = vmul.f32 %v2303_v0, %v259_v21  ;;  %v264_v37 = vld [vmem:[%s2311_s23 + $0x68] sm:$0xff]  ;;  %v263_v38 = vld [vmem:[%s2311_s23 + $0x60] sm:$0xff]  ;;  %v265_v39 = vld [vmem:[%s2311_s23 + $0x70] sm:$0xff] }
  0x13   : > { %403 = vadd.xlane.f32.xlu2 %v402_v11  ;;  %v405_v18 = vsel %vm389_vm0, %v349_v15, 0.0  ;;  %v411_v25 = vsel %vm389_vm0, %v351_v22, 0.0  ;;  %v354_v31 = vmul.f32 %v2303_v0, %v261_v28  ;;  %v353_v32 = vmul.f32 %v2303_v0, %v260_v29  ;;  %v267_v46 = vld [vmem:[%s2311_s23 + $0x80] sm:$0xff]  ;;  %v266_v47 = vld [vmem:[%s2311_s23 + $0x78] sm:$0xff]  ;;  %v268_v48 = vld [vmem:[%s2311_s23 + $0x88] sm:$0xff] }
  0x14   : > { %v408_v26 = vsel %vm389_vm0, %v350_v23, 0.0  ;;  %v414_v27 = vsel %vm389_vm0, %v352_v24, 0.0  ;;  %v355_v33 = vmul.f32 %v2303_v0, %v262_v30  ;;  %v357_v40 = vmul.f32 %v2303_v0, %v264_v37  ;;  %v270_v55 = vld [vmem:[%s2311_s23 + $0x98] sm:$0xff]  ;;  %v269_v56 = vld [vmem:[%s2311_s23 + $0x90] sm:$0xff]  ;;  %v271_v57 = vld [vmem:[%s2311_s23 + $0xa0] sm:$0xff] }
  0x15   : > { %v420_v34 = vsel %vm389_vm0, %v354_v31, 0.0  ;;  %v417_v35 = vsel %vm389_vm0, %v353_v32, 0.0  ;;  %v356_v41 = vmul.f32 %v2303_v0, %v263_v38  ;;  %v358_v42 = vmul.f32 %v2303_v0, %v265_v39  ;;  %v273_v1 = vld [vmem:[%s2311_s23 + $0xb0] sm:$0xff]  ;;  %v272_v2 = vld [vmem:[%s2311_s23 + $0xa8] sm:$0xff]  ;;  %v274_v3 = vld [vmem:[%s2311_s23 + $0xb8] sm:$0xff] }
  0x16   : > { %v423_v36 = vsel %vm389_vm0, %v355_v33, 0.0  ;;  %v429_v43 = vsel %vm389_vm0, %v357_v40, 0.0  ;;  %v360_v49 = vmul.f32 %v2303_v0, %v267_v46  ;;  %v359_v50 = vmul.f32 %v2303_v0, %v266_v47  ;;  %v276_v10 = vld [vmem:[%s2311_s23 + $0xc8] sm:$0xff]  ;;  %v275_v11 = vld [vmem:[%s2311_s23 + $0xc0] sm:$0xff]  ;;  %v277_v12 = vld [vmem:[%s2311_s23 + $0xd0] sm:$0xff] }
  0x17   : > { %v426_v44 = vsel %vm389_vm0, %v356_v41, 0.0  ;;  %v432_v45 = vsel %vm389_vm0, %v358_v42, 0.0  ;;  %v361_v51 = vmul.f32 %v2303_v0, %v268_v48  ;;  %v363_v58 = vmul.f32 %v2303_v0, %v270_v55  ;;  %v279_v19 = vld [vmem:[%s2311_s23 + $0xe0] sm:$0xff]  ;;  %v278_v20 = vld [vmem:[%s2311_s23 + $0xd8] sm:$0xff]  ;;  %v280_v21 = vld [vmem:[%s2311_s23 + $0xe8] sm:$0xff] }
  0x18   : > { %v438_v52 = vsel %vm389_vm0, %v360_v49, 0.0  ;;  %v435_v53 = vsel %vm389_vm0, %v359_v50, 0.0  ;;  %v362_v59 = vmul.f32 %v2303_v0, %v269_v56  ;;  %v364_v60 = vmul.f32 %v2303_v0, %v271_v57  ;;  %v282_v28 = vld [vmem:[%s2311_s23 + $0xf8] sm:$0xff]  ;;  %v281_v29 = vld [vmem:[%s2311_s23 + $0xf0] sm:$0xff]  ;;  %v283_v30 = vld [vmem:[%s2311_s23 + $0x100] sm:$0xff] }
  0x19   : > { %v441_v54 = vsel %vm389_vm0, %v361_v51, 0.0  ;;  %v447_v61 = vsel %vm389_vm0, %v363_v58, 0.0  ;;  %v366_v4 = vmul.f32 %v2303_v0, %v273_v1  ;;  %v365_v5 = vmul.f32 %v2303_v0, %v272_v2  ;;  %v285_v37 = vld [vmem:[%s2311_s23 + $0x110] sm:$0xff]  ;;  %v284_v38 = vld [vmem:[%s2311_s23 + $0x108] sm:$0xff]  ;;  %v286_v39 = vld [vmem:[%s2311_s23 + $0x118] sm:$0xff] }
  0x1a   : > { %400 = vadd.xlane.f32.xlu1 %v399_v16  ;;  %394 = vadd.xlane.f32.xlu0 %v393_v17  ;;  %v444_v62 = vsel %vm389_vm0, %v362_v59, 0.0  ;;  %v450_v63 = vsel %vm389_vm0, %v364_v60, 0.0  ;;  %v367_v6 = vmul.f32 %v2303_v0, %v274_v3  ;;  %v369_v13 = vmul.f32 %v2303_v0, %v276_v10  ;;  %v288_v46 = vld [vmem:[%s2311_s23 + $0x128] sm:$0xff]  ;;  %v287_v47 = vld [vmem:[%s2311_s23 + $0x120] sm:$0xff]  ;;  %v289_v48 = vld [vmem:[%s2311_s23 + $0x130] sm:$0xff] }
  0x1b   : > { %406 = vadd.xlane.f32.xlu2 %v405_v18  ;;  %v456_v7 = vsel %vm389_vm0, %v366_v4, 0.0  ;;  %v453_v8 = vsel %vm389_vm0, %v365_v5, 0.0  ;;  %v368_v14 = vmul.f32 %v2303_v0, %v275_v11  ;;  %v370_v15 = vmul.f32 %v2303_v0, %v277_v12  ;;  %v291_v55 = vld [vmem:[%s2311_s23 + $0x140] sm:$0xff]  ;;  %v290_v56 = vld [vmem:[%s2311_s23 + $0x138] sm:$0xff]  ;;  %v292_v57 = vld [vmem:[%s2311_s23 + $0x148] sm:$0xff] }
  0x1c   : > { %v459_v9 = vsel %vm389_vm0, %v367_v6, 0.0  ;;  %v465_v16 = vsel %vm389_vm0, %v369_v13, 0.0  ;;  %v372_v22 = vmul.f32 %v2303_v0, %v279_v19  ;;  %v371_v23 = vmul.f32 %v2303_v0, %v278_v20  ;;  %v294_v1 = vld [vmem:[%s2311_s23 + $0x158] sm:$0xff]  ;;  %v293_v2 = vld [vmem:[%s2311_s23 + $0x150] sm:$0xff]  ;;  %v295_v3 = vld [vmem:[%s2311_s23 + $0x160] sm:$0xff] }
  0x1d   : > { %v462_v17 = vsel %vm389_vm0, %v368_v14, 0.0  ;;  %v468_v18 = vsel %vm389_vm0, %v370_v15, 0.0  ;;  %v373_v24 = vmul.f32 %v2303_v0, %v280_v21  ;;  %v375_v31 = vmul.f32 %v2303_v0, %v282_v28  ;;  %v298_v10 = vld [vmem:[%s2453_s26 + $0x10] sm:$0xff]  ;;  %v300_v11 = vld [vmem:[%s2453_s26 + $0x20] sm:$0xff] }
  0x1e   : > { %v374_v32 = vmul.f32 %v2303_v0, %v281_v29  ;;  %v376_v33 = vmul.f32 %v2303_v0, %v283_v30  ;;  %v378_v40 = vmul.f32 %v2303_v0, %v285_v37  ;;  %v377_v41 = vmul.f32 %v2303_v0, %v284_v38 }
  0x1f   : > { %v379_v42 = vmul.f32 %v2303_v0, %v286_v39  ;;  %v381_v49 = vmul.f32 %v2303_v0, %v288_v46  ;;  %v380_v50 = vmul.f32 %v2303_v0, %v287_v47  ;;  %v382_v51 = vmul.f32 %v2303_v0, %v289_v48 }
  0x20   : > { %v384_v58 = vmul.f32 %v2303_v0, %v291_v55  ;;  %v383_v59 = vmul.f32 %v2303_v0, %v290_v56  ;;  %v385_v60 = vmul.f32 %v2303_v0, %v292_v57  ;;  %v387_v4 = vmul.f32 %v2303_v0, %v294_v1 }
  0x21   : > { %v386_v5 = vmul.f32 %v2303_v0, %v293_v2  ;;  %v388_v6 = vmul.f32 %v2303_v0, %v295_v3  ;;  %v296_v0 = vld [vmem:[%s2453_s26] sm:$0xff] }
  0x22   : > { %412 = vadd.xlane.f32.xlu1 %v411_v25  ;;  %409 = vadd.xlane.f32.xlu0 %v408_v26  ;;  %v474_v25 = vsel %vm389_vm0, %v372_v22, 0.0  ;;  %v471_v26 = vsel %vm389_vm0, %v371_v23, 0.0  ;;  %v299_v22 = vld [vmem:[%s2453_s26 + $0x18] sm:$0xff]  ;;  %v297_v23 = vld [vmem:[%s2453_s26 + $0x8] sm:$0xff] }
  0x23   : > { %415 = vadd.xlane.f32.xlu2 %v414_v27  ;;  %v477_v27 = vsel %vm389_vm0, %v373_v24, 0.0  ;;  %v301_v24 = vld [vmem:[%s2453_s26 + $0x28] sm:$0xff] }
  0x2a   : > { %421 = vadd.xlane.f32.xlu1 %v420_v34  ;;  %418 = vadd.xlane.f32.xlu0 %v417_v35  ;;  %v483_v34 = vsel %vm389_vm0, %v375_v31, 0.0  ;;  %v480_v35 = vsel %vm389_vm0, %v374_v32, 0.0 }
  0x2b   : > { %424 = vadd.xlane.f32.xlu2 %v423_v36  ;;  %v486_v36 = vsel %vm389_vm0, %v376_v33, 0.0 }
  0x32   : > { %430 = vadd.xlane.f32.xlu1 %v429_v43  ;;  %427 = vadd.xlane.f32.xlu0 %v426_v44  ;;  %v492_v43 = vsel %vm389_vm0, %v378_v40, 0.0  ;;  %v489_v44 = vsel %vm389_vm0, %v377_v41, 0.0  ;;  %v303_v40 = vld [vmem:[%s2453_s26 + $0x38] sm:$0xff]  ;;  %v302_v41 = vld [vmem:[%s2453_s26 + $0x30] sm:$0xff] }
  0x33   : > { %433 = vadd.xlane.f32.xlu2 %v432_v45  ;;  %v495_v45 = vsel %vm389_vm0, %v379_v42, 0.0  ;;  %v304_v42 = vld [vmem:[%s2453_s26 + $0x40] sm:$0xff] }
  0x3a   : > { %439 = vadd.xlane.f32.xlu1 %v438_v52  ;;  %436 = vadd.xlane.f32.xlu0 %v435_v53  ;;  %v501_v52 = vsel %vm389_vm0, %v381_v49, 0.0  ;;  %v498_v53 = vsel %vm389_vm0, %v380_v50, 0.0 }
  0x3b   : > { %442 = vadd.xlane.f32.xlu2 %v441_v54  ;;  %v504_v54 = vsel %vm389_vm0, %v382_v51, 0.0 }
  0x42   : > { %448 = vadd.xlane.f32.xlu1 %v447_v61  ;;  %445 = vadd.xlane.f32.xlu0 %v444_v62  ;;  %v510_v61 = vsel %vm389_vm0, %v384_v58, 0.0  ;;  %v507_v62 = vsel %vm389_vm0, %v383_v59, 0.0 }
  0x43   : > { %451 = vadd.xlane.f32.xlu2 %v450_v63  ;;  %v513_v63 = vsel %vm389_vm0, %v385_v60, 0.0 }
  0x4a   : > { %457 = vadd.xlane.f32.xlu1 %v456_v7  ;;  %454 = vadd.xlane.f32.xlu0 %v453_v8  ;;  %v519_v7 = vsel %vm389_vm0, %v387_v4, 0.0  ;;  %v516_v8 = vsel %vm389_vm0, %v386_v5, 0.0  ;;  %v306_v4 = vld [vmem:[%s2453_s26 + $0x50] sm:$0xff]  ;;  %v305_v5 = vld [vmem:[%s2453_s26 + $0x48] sm:$0xff] }
  0x4b   : > { %460 = vadd.xlane.f32.xlu2 %v459_v9  ;;  %v522_v9 = vsel %vm389_vm0, %v388_v6, 0.0 }
  0x52   : > { %466 = vadd.xlane.f32.xlu1 %v465_v16  ;;  %463 = vadd.xlane.f32.xlu0 %v462_v17 }
  0x53   : > { %469 = vadd.xlane.f32.xlu2 %v468_v18  ;;  %v2264_v18 = vmov 0  }
  0x54   : > { %2074 = vset.pattern.permute.xlu2 %v2264_v18  ;;  %2072 = vset.pattern.permute.xlu0 %v2264_v18 }
  0x55   : > { %2073 = vset.pattern.permute.xlu1 %v2264_v18 }
  0x5a   : > { %475 = vadd.xlane.f32.xlu1 %v474_v25  ;;  %472 = vadd.xlane.f32.xlu0 %v471_v26 }
  0x5b   : > { %478 = vadd.xlane.f32.xlu2 %v477_v27 }
  0x62   : > { %484 = vadd.xlane.f32.xlu1 %v483_v34  ;;  %481 = vadd.xlane.f32.xlu0 %v480_v35 }
  0x63   : > { %487 = vadd.xlane.f32.xlu2 %v486_v36 }
  0x6a   : > { %493 = vadd.xlane.f32.xlu1 %v492_v43  ;;  %490 = vadd.xlane.f32.xlu0 %v489_v44 }
  0x6b   : > { %496 = vadd.xlane.f32.xlu2 %v495_v45 }
  0x72   : > { %502 = vadd.xlane.f32.xlu1 %v501_v52  ;;  %499 = vadd.xlane.f32.xlu0 %v498_v53 }
  0x73   : > { %505 = vadd.xlane.f32.xlu2 %v504_v54 }
  0x7a   : > { %511 = vadd.xlane.f32.xlu1 %v510_v61  ;;  %508 = vadd.xlane.f32.xlu0 %v507_v62 }
  0x7b   : > { %514 = vadd.xlane.f32.xlu2 %v513_v63 }
  0x82   : > { %520 = vadd.xlane.f32.xlu1 %v519_v7  ;;  %517 = vadd.xlane.f32.xlu0 %v516_v8 }
  0x83   : > { %523 = vadd.xlane.f32.xlu2 %v522_v9 }
  0x85   : > { %v398_v12 = vpop.xlane.xlu1 %397  ;;  %v392_v13 = vpop.xlane.xlu0 %391 }
  0x86   : > { %v527_v14 = vadd.f32 %v398_v12, %v298_v10  ;;  %v525_v15 = vadd.f32 %v392_v13, %v296_v0  ;;  %v404_v16 = vpop.xlane.xlu2 %403  ;;  %v307_v10 = vld [vmem:[%s2453_s26 + $0x58] sm:$0xff] }
  0x87   : > { %v529_v17 = vadd.f32 %v404_v16, %v300_v11 }
  0x88   : > { %v2016_v19 = vmul.f32 -1.442695, %v527_v14  ;;  %v2014_v20 = vmul.f32 -1.442695, %v525_v15 }
  0x89   : > { %v2018_v21 = vmul.f32 -1.442695, %v529_v17 }
  0x8a   : > { %2076 = vpow2.f32 %v2016_v19 }
  0x8b   : > { %2078 = vpow2.f32 %v2014_v20 }
  0x8c   : > { %2080 = vpow2.f32 %v2018_v21 }
  0x8d   : > { %v401_v25 = vpop.xlane.xlu1 %400  ;;  %v395_v26 = vpop.xlane.xlu0 %394 }
  0x8e   : > { %v528_v27 = vadd.f32 %v401_v25, %v299_v22  ;;  %v526_v28 = vadd.f32 %v395_v26, %v297_v23  ;;  %v407_v29 = vpop.xlane.xlu2 %406 }
  0x8f   : > { %v530_v30 = vadd.f32 %v407_v29, %v301_v24 }
  0x90   : > { %v2077_v31 = vpop.eup %2076  ;;  %v2017_v32 = vmul.f32 -1.442695, %v528_v27  ;;  %v2015_v37 = vmul.f32 -1.442695, %v526_v28 }
  0x91   : > { %v2079_v33 = vpop.eup %2078  ;;  %v2461_v34 = vadd.f32 1.0, %v2077_v31  ;;  %v2019_v39 = vmul.f32 -1.442695, %v530_v30 }
  0x92   : > { %v2081_v35 = vpop.eup %2080  ;;  %v2463_v36 = vadd.f32 1.0, %v2079_v33  ;;  %2082 = vpow2.f32 %v2017_v32 }
  0x93   : > { %2084 = vrcp.f32 %v2461_v34  ;;  %v2466_v38 = vadd.f32 1.0, %v2081_v35  ;;  %v789_v45 = vand.u32 2147483647, %v2461_v34  ;;  %v791_v46 = vand.u32 2147483648, %v2461_v34 }
  0x94   : > { %2086 = vrcp.f32 %v2463_v36  ;;  %v761_v50 = vand.u32 2147483648, %v2463_v36  ;;  %v759_v52 = vand.u32 2147483647, %v2463_v36  ;;  %vm785_vm1 = vweird.f32 %v2461_v34 }
  0x95   : > { %2088 = vrcp.f32 %v2466_v38  ;;  %v413_v43 = vpop.xlane.xlu1 %412  ;;  %v410_v44 = vpop.xlane.xlu0 %409  ;;  %v821_v56 = vand.u32 2147483648, %v2466_v38  ;;  %v792_v60 = vor.u32 1.1754944e-38, %v791_v46  ;;  %vm755_vm2 = vweird.f32 %v2463_v36 }
  0x96   : > { %2090 = vpow2.f32 %v2015_v37  ;;  %v532_v47 = vadd.f32 %v413_v43, %v303_v40  ;;  %v531_v48 = vadd.f32 %v410_v44, %v302_v41  ;;  %v416_v49 = vpop.xlane.xlu2 %415  ;;  %vm2488_vm3 = vcmp.eq.f32.partialorder %v789_v45, 8.507059e+37  ;;  %v309_v44 = vld [vmem:[%s2453_s26 + $0x68] sm:$0xff]  ;;  %v308_v45 = vld [vmem:[%s2453_s26 + $0x60] sm:$0xff] }
  0x97   : > { %2092 = vpow2.f32 %v2019_v39  ;;  %v533_v51 = vadd.f32 %v416_v49, %v304_v42  ;;  %v762_v1 = vor.u32 1.1754944e-38, %v761_v50  ;;  %v819_v2 = vand.u32 2147483647, %v2466_v38 }
  0x98   : > { %v2083_v53 = vpop.eup %2082  ;;  %v2021_v54 = vmul.f32 -1.442695, %v532_v47  ;;  %v2020_v55 = vmul.f32 -1.442695, %v531_v48  ;;  %vm2501_vm5 = vcmp.eq.f32.partialorder %v759_v52, 8.507059e+37  ;;  %v2505_v8 = vor.u32 1.1754944e-38, %v821_v56 }
  0x99   : > { %v2479_v57 = vpop.eup %2084  ;;  %v2481_v58 = vadd.f32 1.0, %v2083_v53  ;;  %v2022_v59 = vmul.f32 -1.442695, %v533_v51  ;;  %v310_v48 = vld [vmem:[%s2453_s26 + $0x70] sm:$0xff] }
  0x9a   : > { %v2484_v61 = vpop.eup %2086  ;;  %2094 = vpow2.f32 %v2021_v54  ;;  %v781_v62 = vmul.f32 %v2479_v57, %v2461_v34  ;;  %vm786_vm4 = vweird.f32 %v2479_v57 }
  0x9b   : > { %v2493_v3 = vpop.eup %2088  ;;  %2096 = vrcp.f32 %v2481_v58  ;;  %v751_v6 = vmul.f32 %v2484_v61, %v2463_v36  ;;  %vm756_vm6 = vweird.f32 %v2484_v61  ;;  %v804_v11 = vand.u32 2147483647, %v2481_v58  ;;  %vm787_vm8 = vmor %vm785_vm1, %vm786_vm4 }
  0x9c   : > { %v2091_v9 = vpop.eup %2090  ;;  %2098 = vpow2.f32 %v2020_v55  ;;  %v782_v0 = vsub.f32 1.0, %v781_v62  ;;  %v806_v17 = vand.u32 2147483648, %v2481_v58  ;;  %vm800_vm7 = vweird.f32 %v2481_v58  ;;  %vm757_vm9 = vmor %vm755_vm2, %vm756_vm6 }
  0x9d   : > { %v2093_v12 = vpop.eup %2092  ;;  %v2510_v13 = vadd.f32 1.0, %v2091_v9  ;;  %2100 = vpow2.f32 %v2022_v59  ;;  %v422_v14 = vpop.xlane.xlu1 %421  ;;  %v752_v16 = vsub.f32 1.0, %v751_v6  ;;  %v2521_v25 = vmul.f32 %v2493_v3, %v2466_v38 }
  0x9e   : > { %v419_v15 = vpop.xlane.xlu0 %418  ;;  %v2513_v18 = vadd.f32 1.0, %v2093_v12  ;;  %v535_v19 = vadd.f32 %v422_v14, %v306_v4  ;;  %v425_v21 = vpop.xlane.xlu2 %424  ;;  %v783_v22 = vmul.f32 %v2479_v57, %v782_v0  ;;  %v807_v35 = vor.u32 1.1754944e-38, %v806_v17 }
  0x9f   : > { %v534_v20 = vadd.f32 %v419_v15, %v305_v5  ;;  %2102 = vrcp.f32 %v2510_v13  ;;  %v536_v23 = vadd.f32 %v425_v21, %v307_v10  ;;  %v753_v24 = vmul.f32 %v2484_v61, %v752_v16  ;;  %v311_v21 = vld [vmem:[%s2453_s26 + $0x78] sm:$0xff] }
  0xa0   : > { %v2095_v26 = vpop.eup %2094  ;;  %2104 = vrcp.f32 %v2513_v18  ;;  %v2024_v27 = vmul.f32 -1.442695, %v535_v19  ;;  %v784_v29 = vadd.f32 %v2479_v57, %v783_v22  ;;  %vm2542_vm11 = vcmp.eq.f32.partialorder %v804_v11, 8.507059e+37 }
  0xa1   : > { %v2023_v28 = vmul.f32 -1.442695, %v534_v20  ;;  %v2525_v30 = vpop.eup %2096  ;;  %v2527_v31 = vadd.f32 1.0, %v2095_v26  ;;  %v2025_v32 = vmul.f32 -1.442695, %v536_v23  ;;  %v754_v33 = vadd.f32 %v2484_v61, %v753_v24  ;;  %v312_v20 = vld [vmem:[%s2453_s26 + $0x80] sm:$0xff] }
  0xa2   : > { %v2099_v37 = vpop.eup %2098  ;;  %2106 = vpow2.f32 %v2024_v27  ;;  %v788_v39 = vsel %vm787_vm8, %v2479_v57, %v784_v29  ;;  %v796_v40 = vmul.f32 %v2525_v30, %v2481_v58  ;;  %vm801_vm10 = vweird.f32 %v2525_v30  ;;  %v313_v23 = vld [vmem:[%s2453_s26 + $0x88] sm:$0xff] }
  0xa3   : > { %v2101_v41 = vpop.eup %2100  ;;  %2108 = vrcp.f32 %v2527_v31  ;;  %v2547_v42 = vadd.f32 1.0, %v2099_v37  ;;  %v793_v43 = vsel %vm2488_vm3, %v792_v60, %v788_v39  ;;  %v758_v36 = vsel %vm757_vm9, %v2484_v61, %v754_v33  ;;  %vm802_vm15 = vmor %vm800_vm7, %vm801_vm10 }
  0xa4   : > { %v2554_v46 = vadd.f32 1.0, %v2101_v41  ;;  %2110 = vpow2.f32 %v2023_v28  ;;  %1527 = vperm.xlu2 %2074, %v793_v43   ;;  %v763_v47 = vsel %vm2501_vm5, %v762_v1, %v758_v36  ;;  %v797_v49 = vsub.f32 1.0, %v796_v40 }
  0xa5   : > { %v2559_v50 = vpop.eup %2102  ;;  %2112 = vrcp.f32 %v2547_v42  ;;  %1517 = vperm.xlu0 %2072, %v763_v47   ;;  %v431_v51 = vpop.xlane.xlu1 %430  ;;  %vm770_vm12 = vweird.f32 %v2510_v13  ;;  %v774_v53 = vand.u32 2147483647, %v2510_v13  ;;  %v776_v54 = vand.u32 2147483648, %v2510_v13 }
  0xa6   : > { %v428_v52 = vpop.xlane.xlu0 %427  ;;  %v2565_v55 = vpop.eup %2104  ;;  %2114 = vrcp.f32 %v2554_v46  ;;  %v538_v56 = vadd.f32 %v431_v51, %v309_v44  ;;  %v798_v60 = vmul.f32 %v2525_v30, %v797_v49  ;;  %v766_v62 = vmul.f32 %v2559_v50, %v2510_v13 }
  0xa7   : > { %v537_v57 = vadd.f32 %v428_v52, %v308_v45  ;;  %v434_v59 = vpop.xlane.xlu2 %433  ;;  %2116 = vpow2.f32 %v2025_v32  ;;  %vm771_vm13 = vweird.f32 %v2559_v50  ;;  %vm2573_vm14 = vcmp.eq.f32.partialorder %v774_v53, 8.507059e+37 }
  0xa8   : > { %v539_v61 = vadd.f32 %v434_v59, %v310_v48  ;;  %v2107_v63 = vpop.eup %2106  ;;  %v2027_v1 = vmul.f32 -1.442695, %v538_v56  ;;  %v799_v5 = vadd.f32 %v2525_v30, %v798_v60  ;;  %v767_v0 = vsub.f32 1.0, %v766_v62  ;;  %vm772_vm3 = vmor %vm770_vm12, %vm771_vm13 }
  0xa9   : > { %v2026_v4 = vmul.f32 -1.442695, %v537_v57  ;;  %v2577_v7 = vpop.eup %2108  ;;  %v2579_v9 = vadd.f32 1.0, %v2107_v63  ;;  %v777_v11 = vor.u32 1.1754944e-38, %v776_v54  ;;  %v826_v15 = vmul.f32 %v2565_v55, %v2513_v18 }
  0xaa   : > { %v2028_v10 = vmul.f32 -1.442695, %v539_v61  ;;  %v2111_v12 = vpop.eup %2110  ;;  %2118 = vpow2.f32 %v2027_v1  ;;  %v803_v14 = vsel %vm802_vm15, %v2525_v30, %v799_v5  ;;  %vm830_vm0 = vweird.f32 %v2513_v18 }
  0xab   : > { %v2589_v16 = vpop.eup %2112  ;;  %2120 = vrcp.f32 %v2579_v9  ;;  %v2592_v17 = vadd.f32 1.0, %v2111_v12  ;;  %v808_v58 = vsel %vm2542_vm11, %v807_v35, %v803_v14  ;;  %v768_v19 = vmul.f32 %v2559_v50, %v767_v0  ;;  %v314_v0 = vld [vmem:[%s2453_s26 + $0x90] sm:$0xff]  ;;  %v316_v12 = vld [vmem:[%s2453_s26 + $0xa0] sm:$0xff] }
  0xac   : > { %v2599_v22 = vpop.eup %2114  ;;  %2122 = vpow2.f32 %v2026_v4  ;;  %1532 = vperm.xlu2 %2074, %v808_v58   ;;  %v827_v24 = vsub.f32 1.0, %v826_v15  ;;  %vm831_vm1 = vweird.f32 %v2565_v55  ;;  %v834_v26 = vand.u32 2147483647, %v2513_v18  ;;  %v315_v4 = vld [vmem:[%s2453_s26 + $0x98] sm:$0xff] }
  0xad   : > { %v2117_v27 = vpop.eup %2116  ;;  %2124 = vrcp.f32 %v2592_v17  ;;  %v769_v28 = vadd.f32 %v2559_v50, %v768_v19  ;;  %v440_v29 = vpop.xlane.xlu1 %439  ;;  %v836_v32 = vand.u32 2147483648, %v2513_v18  ;;  %v856_v33 = vmul.f32 %v2577_v7, %v2527_v31  ;;  %vm2629_vm5 = vmor %vm830_vm0, %vm831_vm1 }
  0xae   : > { %v437_v30 = vpop.xlane.xlu0 %436  ;;  %vm815_vm2 = vweird.f32 %v2466_v38  ;;  %v2610_v35 = vadd.f32 1.0, %v2117_v27  ;;  %2126 = vpow2.f32 %v2028_v10  ;;  %v541_v37 = vadd.f32 %v440_v29, %v312_v20 }
  0xaf   : > { %v540_v39 = vadd.f32 %v437_v30, %v311_v21  ;;  %v443_v40 = vpop.xlane.xlu2 %442  ;;  %v773_v34 = vsel %vm772_vm3, %v2559_v50, %v769_v28  ;;  %v828_v43 = vmul.f32 %v2565_v55, %v827_v24  ;;  %vm2618_vm4 = vcmp.eq.f32.partialorder %v834_v26, 8.507059e+37 }
  0xb0   : > { %v542_v41 = vadd.f32 %v443_v40, %v313_v23  ;;  %v2119_v44 = vpop.eup %2118  ;;  %2128 = vrcp.f32 %v2610_v35  ;;  %v778_v45 = vsel %vm2573_vm14, %v777_v11, %v773_v34  ;;  %v2030_v13 = vmul.f32 -1.442695, %v541_v37 }
  0xb1   : > { %v2029_v47 = vmul.f32 -1.442695, %v540_v39  ;;  %v2633_v49 = vpop.eup %2120  ;;  %v2635_v50 = vadd.f32 1.0, %v2119_v44  ;;  %1522 = vperm.xlu1 %2073, %v778_v45   ;;  %v829_v52 = vadd.f32 %v2565_v55, %v828_v43  ;;  %v837_v53 = vor.u32 1.1754944e-38, %v836_v32 }
  0xb2   : > { %v2031_v51 = vmul.f32 -1.442695, %v542_v41  ;;  %v2123_v54 = vpop.eup %2122  ;;  %2130 = vpow2.f32 %v2030_v13  ;;  %v857_v56 = vsub.f32 1.0, %v856_v33  ;;  %vm860_vm6 = vweird.f32 %v2527_v31 }
  0xb3   : > { %vm861_vm7 = vweird.f32 %v2577_v7  ;;  %v2640_v18 = vpop.eup %2124  ;;  %2132 = vrcp.f32 %v2635_v50  ;;  %v2643_v57 = vadd.f32 1.0, %v2123_v54  ;;  %v833_v59 = vsel %vm2629_vm5, %v2565_v55, %v829_v52 }
  0xb4   : > { %v864_v60 = vand.u32 2147483647, %v2527_v31  ;;  %v2127_v61 = vpop.eup %2126  ;;  %2134 = vpow2.f32 %v2029_v47  ;;  %v838_v62 = vsel %vm2618_vm4, %v837_v53, %v833_v59  ;;  %v858_v63 = vmul.f32 %v2577_v7, %v857_v56  ;;  %vm862_vm10 = vmor %vm860_vm6, %vm861_vm7 }
  0xb5   : > { %v866_v1 = vand.u32 2147483648, %v2527_v31  ;;  %2136 = vrcp.f32 %v2643_v57  ;;  %v2655_v5 = vadd.f32 1.0, %v2127_v61  ;;  %1542 = vperm.xlu2 %2074, %v838_v62   ;;  %v812_v6 = vsub.f32 1.0, %v2521_v25  ;;  %v449_v10 = vpop.xlane.xlu1 %448 }
  0xb6   : > { %vm2657_vm8 = vcmp.eq.f32.partialorder %v864_v60, 8.507059e+37  ;;  %v446_v11 = vpop.xlane.xlu0 %445  ;;  %v2664_v14 = vpop.eup %2128  ;;  %2138 = vpow2.f32 %v2031_v51  ;;  %v859_v15 = vadd.f32 %v2577_v7, %v858_v63  ;;  %vm816_vm9 = vweird.f32 %v2493_v3  ;;  %v318_v63 = vld [vmem:[%s2453_s26 + $0xb0] sm:$0xff] }
  0xb7   : > { %v867_v58 = vor.u32 1.1754944e-38, %v866_v1  ;;  %2140 = vrcp.f32 %v2655_v5  ;;  %v813_v25 = vmul.f32 %v2493_v3, %v812_v6  ;;  %vm2676_vm11 = vcmp.eq.f32.partialorder %v819_v2, 8.507059e+37  ;;  %v452_v21 = vpop.xlane.xlu2 %451  ;;  %vm2683_vm12 = vmor %vm815_vm2, %vm816_vm9  ;;  %v319_v6 = vld [vmem:[%s2453_s26 + $0xb8] sm:$0xff] }
  0xb8   : > { %v544_v20 = vadd.f32 %v449_v10, %v315_v4  ;;  %v2131_v23 = vpop.eup %2130  ;;  %v863_v24 = vsel %vm862_vm10, %v2577_v7, %v859_v15  ;;  %v543_v31 = vadd.f32 %v446_v11, %v314_v0  ;;  %v545_v27 = vadd.f32 %v452_v21, %v316_v12  ;;  %v317_v4 = vld [vmem:[%s2453_s26 + $0xa8] sm:$0xff] }
  0xb9   : > { %v871_v28 = vmul.f32 %v2599_v22, %v2554_v46  ;;  %v2689_v2 = vpop.eup %2132  ;;  %v2691_v29 = vadd.f32 1.0, %v2131_v23  ;;  %v868_v30 = vsel %vm2657_vm8, %v867_v58, %v863_v24  ;;  %v814_v7 = vadd.f32 %v2493_v3, %v813_v25 }
  0xba   : > { %v2033_v32 = vmul.f32 -1.442695, %v544_v20  ;;  %v2135_v38 = vpop.eup %2134  ;;  %1552 = vperm.xlu0 %2072, %v868_v30   ;;  %v2032_v33 = vmul.f32 -1.442695, %v543_v31  ;;  %v2034_v37 = vmul.f32 -1.442695, %v545_v27  ;;  %vm875_vm13 = vweird.f32 %v2554_v46 }
  0xbb   : > { %v872_v39 = vsub.f32 1.0, %v871_v28  ;;  %v2697_v40 = vpop.eup %2136  ;;  %2142 = vrcp.f32 %v2691_v29  ;;  %v2700_v34 = vadd.f32 1.0, %v2135_v38  ;;  %v818_v41 = vsel %vm2683_vm12, %v2493_v3, %v814_v7 }
  0xbc   : > { %vm876_vm14 = vweird.f32 %v2599_v22  ;;  %v2139_v43 = vpop.eup %2138  ;;  %v823_v36 = vsel %vm2676_vm11, %v2505_v8, %v818_v41  ;;  %2144 = vpow2.f32 %v2033_v32  ;;  %v879_v45 = vand.u32 2147483647, %v2554_v46 }
  0xbd   : > { %v873_v44 = vmul.f32 %v2599_v22, %v872_v39  ;;  %v2711_v13 = vpop.eup %2140  ;;  %2146 = vrcp.f32 %v2700_v34  ;;  %v2714_v47 = vadd.f32 1.0, %v2139_v43  ;;  %1537 = vperm.xlu1 %2073, %v823_v36   ;;  %vm2718_vm15 = vmor %vm875_vm13, %vm876_vm14  ;;  %v881_v8 = vand.u32 2147483648, %v2554_v46  ;;  %v458_v1 = vpop.xlane.xlu1 %457 }
  0xbe   : > { %v901_v48 = vmul.f32 %v2633_v49, %v2579_v9  ;;  %2148 = vpow2.f32 %v2032_v33  ;;  %vm880_vm0 = vcmp.eq.f32.partialorder %v879_v45, 8.507059e+37  ;;  %vm905_vm1 = vweird.f32 %v2579_v9  ;;  %v455_v55 = vpop.xlane.xlu0 %454 }
  0xbf   : > { %v874_v51 = vadd.f32 %v2599_v22, %v873_v44  ;;  %2150 = vrcp.f32 %v2714_v47  ;;  %v882_v52 = vor.u32 1.1754944e-38, %v881_v8  ;;  %vm906_vm2 = vweird.f32 %v2633_v49  ;;  %v461_v20 = vpop.xlane.xlu2 %460 }
  0xc0   : > { %v902_v53 = vsub.f32 1.0, %v901_v48  ;;  %2152 = vpow2.f32 %v2034_v37  ;;  %v909_v54 = vand.u32 2147483647, %v2579_v9  ;;  %v911_v56 = vand.u32 2147483648, %v2579_v9  ;;  %vm907_vm6 = vmor %vm905_vm1, %vm906_vm2 }
  0xc1   : > { %v878_v46 = vsel %vm2718_vm15, %v2599_v22, %v874_v51  ;;  %v2734_v59 = vpop.eup %2142  ;;  %v841_v62 = vmul.f32 %v2589_v16, %v2547_v42  ;;  %vm845_vm3 = vweird.f32 %v2547_v42  ;;  %vm846_vm5 = vweird.f32 %v2589_v16 }
  0xc2   : > { %v883_v60 = vsel %vm880_vm0, %v882_v52, %v878_v46  ;;  %v903_v61 = vmul.f32 %v2633_v49, %v902_v53  ;;  %v2145_v22 = vpop.eup %2144  ;;  %vm2743_vm4 = vcmp.eq.f32.partialorder %v909_v54, 8.507059e+37  ;;  %v912_v0 = vor.u32 1.1754944e-38, %v911_v56  ;;  %vm847_vm8 = vmor %vm845_vm3, %vm846_vm5 }
  0xc3   : > { %1557 = vperm.xlu2 %2074, %v883_v60   ;;  %v849_v11 = vand.u32 2147483647, %v2547_v42  ;;  %v2749_v12 = vpop.eup %2146  ;;  %v2751_v15 = vadd.f32 1.0, %v2145_v22  ;;  %v842_v25 = vsub.f32 1.0, %v841_v62  ;;  %v851_v19 = vand.u32 2147483648, %v2547_v42  ;;  %v321_v62 = vld [vmem:[%s2453_s26 + $0xc8] sm:$0xff] }
  0xc4   : > { %v904_v58 = vadd.f32 %v2633_v49, %v903_v61  ;;  %v2149_v21 = vpop.eup %2148  ;;  %v547_v24 = vadd.f32 %v458_v1, %v318_v63  ;;  %v546_v26 = vadd.f32 %v455_v55, %v317_v4  ;;  %v548_v31 = vadd.f32 %v461_v20, %v319_v6 }
  0xc5   : > { %vm2759_vm7 = vcmp.eq.f32.partialorder %v849_v11, 8.507059e+37  ;;  %v2763_v27 = vpop.eup %2150  ;;  %2154 = vrcp.f32 %v2751_v15  ;;  %v2766_v28 = vadd.f32 1.0, %v2149_v21  ;;  %v843_v7 = vmul.f32 %v2589_v16, %v842_v25  ;;  %v467_v63 = vpop.xlane.xlu1 %466 }
  0xc6   : > { %v908_v30 = vsel %vm907_vm6, %v2633_v49, %v904_v58  ;;  %v2153_v32 = vpop.eup %2152  ;;  %v852_v38 = vor.u32 1.1754944e-38, %v851_v19  ;;  %v2036_v33 = vmul.f32 -1.442695, %v547_v24  ;;  %v2035_v37 = vmul.f32 -1.442695, %v546_v26  ;;  %v320_v24 = vld [vmem:[%s2453_s26 + $0xc0] sm:$0xff]  ;;  %v464_v26 = vpop.xlane.xlu0 %463 }
  0xc7   : > { %v913_v9 = vsel %vm2743_vm4, %v912_v0, %v908_v30  ;;  %2156 = vrcp.f32 %v2766_v28  ;;  %v2773_v39 = vadd.f32 1.0, %v2153_v32  ;;  %v844_v41 = vadd.f32 %v2589_v16, %v843_v7  ;;  %v322_v32 = vld [vmem:[%s2453_s26 + $0xd0] sm:$0xff] }
  0xc8   : > { %1567 = vperm.xlu0 %2072, %v913_v9   ;;  %v2037_v43 = vmul.f32 -1.442695, %v548_v31  ;;  %2158 = vpow2.f32 %v2036_v33  ;;  %v916_v49 = vmul.f32 %v2664_v14, %v2610_v35  ;;  %vm920_vm9 = vweird.f32 %v2610_v35  ;;  %v470_v9 = vpop.xlane.xlu2 %469 }
  0xc9   : > { %vm921_vm10 = vweird.f32 %v2664_v14  ;;  %2160 = vrcp.f32 %v2773_v39  ;;  %v848_v36 = vsel %vm847_vm8, %v2589_v16, %v844_v41  ;;  %v924_v44 = vand.u32 2147483647, %v2610_v35 }
  0xca   : > { %v926_v45 = vand.u32 2147483648, %v2610_v35  ;;  %v853_v42 = vsel %vm2759_vm7, %v852_v38, %v848_v36  ;;  %2162 = vpow2.f32 %v2035_v37  ;;  %v917_v3 = vsub.f32 1.0, %v916_v49  ;;  %vm2808_vm14 = vmor %vm920_vm9, %vm921_vm10 }
  0xcb   : > { %v946_v8 = vmul.f32 %v2689_v2, %v2635_v50  ;;  %v2792_v48 = vpop.eup %2154  ;;  %1547 = vperm.xlu1 %2073, %v853_v42   ;;  %2164 = vpow2.f32 %v2037_v43  ;;  %vm2794_vm11 = vcmp.eq.f32.partialorder %v924_v44, 8.507059e+37  ;;  %vm950_vm12 = vweird.f32 %v2635_v50 }
  0xcc   : > { %v927_v16 = vor.u32 1.1754944e-38, %v926_v45  ;;  %v918_v52 = vmul.f32 %v2664_v14, %v917_v3  ;;  %vm951_vm13 = vweird.f32 %v2689_v2  ;;  %v954_v46 = vand.u32 2147483647, %v2635_v50 }
  0xcd   : > { %v947_v53 = vsub.f32 1.0, %v946_v8  ;;  %v2802_v54 = vpop.eup %2156  ;;  %v956_v60 = vand.u32 2147483648, %v2635_v50  ;;  %v886_v61 = vmul.f32 %v2640_v18, %v2592_v17  ;;  %vm890_vm15 = vweird.f32 %v2592_v17  ;;  %vm952_vm3 = vmor %vm950_vm12, %vm951_vm13  ;;  %v476_v55 = vpop.xlane.xlu1 %475 }
  0xce   : > { %vm891_vm0 = vweird.f32 %v2640_v18  ;;  %v2159_v1 = vpop.eup %2158  ;;  %v919_v4 = vadd.f32 %v2664_v14, %v918_v52  ;;  %vm2820_vm1 = vcmp.eq.f32.partialorder %v954_v46, 8.507059e+37  ;;  %v894_v6 = vand.u32 2147483647, %v2592_v17 }
  0xcf   : > { %v948_v35 = vmul.f32 %v2689_v2, %v947_v53  ;;  %v2825_v22 = vpop.eup %2160  ;;  %v2827_v10 = vadd.f32 1.0, %v2159_v1  ;;  %v957_v0 = vor.u32 1.1754944e-38, %v956_v60  ;;  %v887_v11 = vsub.f32 1.0, %v886_v61  ;;  %vm892_vm4 = vmor %vm890_vm15, %vm891_vm0 }
  0xd0   : > { %v896_v58 = vand.u32 2147483648, %v2592_v17  ;;  %v2163_v25 = vpop.eup %2162  ;;  %v923_v19 = vsel %vm2808_vm14, %v2664_v14, %v919_v4  ;;  %vm2834_vm2 = vcmp.eq.f32.partialorder %v894_v6, 8.507059e+37  ;;  %v550_v23 = vadd.f32 %v467_v63, %v321_v62 }
  0xd1   : > { %v949_v20 = vadd.f32 %v2689_v2, %v948_v35  ;;  %v2165_v31 = vpop.eup %2164  ;;  %2166 = vrcp.f32 %v2827_v10  ;;  %v2840_v30 = vadd.f32 1.0, %v2163_v25  ;;  %v928_v7 = vsel %vm2794_vm11, %v927_v16, %v923_v19  ;;  %v479_v19 = vpop.xlane.xlu2 %478 }
  0xd2   : > { %v888_v14 = vmul.f32 %v2640_v18, %v887_v11  ;;  %v2850_v38 = vadd.f32 1.0, %v2165_v31  ;;  %1572 = vperm.xlu2 %2074, %v928_v7   ;;  %v897_v37 = vor.u32 1.1754944e-38, %v896_v58  ;;  %v2039_v41 = vmul.f32 -1.442695, %v550_v23  ;;  %v473_v31 = vpop.xlane.xlu0 %472 }
  0xd3   : > { %v953_v33 = vsel %vm952_vm3, %v2689_v2, %v949_v20  ;;  %2168 = vrcp.f32 %v2840_v30  ;;  %v549_v50 = vadd.f32 %v464_v26, %v320_v24  ;;  %v551_v36 = vadd.f32 %v470_v9, %v322_v32  ;;  %v323_v26 = vld [vmem:[%s2453_s26 + $0xd8] sm:$0xff] }
  0xd4   : > { %v958_v43 = vsel %vm2820_vm1, %v957_v0, %v953_v33  ;;  %v889_v49 = vadd.f32 %v2640_v18, %v888_v14  ;;  %2170 = vrcp.f32 %v2850_v38  ;;  %v961_v2 = vmul.f32 %v2711_v13, %v2655_v5 }
  0xd5   : > { %1582 = vperm.xlu0 %2072, %v958_v43   ;;  %vm965_vm5 = vweird.f32 %v2655_v5  ;;  %2172 = vpow2.f32 %v2039_v41  ;;  %v2038_v45 = vmul.f32 -1.442695, %v549_v50  ;;  %vm966_vm6 = vweird.f32 %v2711_v13  ;;  %v485_v11 = vpop.xlane.xlu1 %484 }
  0xd6   : > { %v893_v44 = vsel %vm892_vm4, %v2640_v18, %v889_v49  ;;  %v2040_v3 = vmul.f32 -1.442695, %v551_v36  ;;  %v962_v8 = vsub.f32 1.0, %v961_v2  ;;  %v969_v17 = vand.u32 2147483647, %v2655_v5  ;;  %vm2888_vm10 = vmor %vm965_vm5, %vm966_vm6 }
  0xd7   : > { %v898_v42 = vsel %vm2834_vm2, %v897_v37, %v893_v44  ;;  %v2870_v51 = vpop.eup %2166  ;;  %2174 = vpow2.f32 %v2038_v45  ;;  %v971_v16 = vand.u32 2147483648, %v2655_v5  ;;  %v991_v18 = vmul.f32 %v2734_v59, %v2691_v29  ;;  %v324_v5 = vld [vmem:[%s2453_s26 + $0xe0] sm:$0xff]  ;;  %v325_v37 = vld [vmem:[%s2453_s26 + $0xe8] sm:$0xff] }
  0xd8   : > { %1562 = vperm.xlu1 %2073, %v898_v42   ;;  %vm995_vm7 = vweird.f32 %v2691_v29  ;;  %2176 = vpow2.f32 %v2040_v3  ;;  %v963_v52 = vmul.f32 %v2711_v13, %v962_v8  ;;  %vm2877_vm8 = vcmp.eq.f32.partialorder %v969_v17, 8.507059e+37 }
  0xd9   : > { %vm996_vm9 = vweird.f32 %v2734_v59  ;;  %v2882_v46 = vpop.eup %2168  ;;  %v972_v60 = vor.u32 1.1754944e-38, %v971_v16  ;;  %v992_v61 = vsub.f32 1.0, %v991_v18  ;;  %v999_v62 = vand.u32 2147483647, %v2691_v29 }
  0xda   : > { %v1001_v63 = vand.u32 2147483648, %v2691_v29  ;;  %v2894_v1 = vpop.eup %2170  ;;  %v964_v4 = vadd.f32 %v2711_v13, %v963_v52  ;;  %v931_v35 = vmul.f32 %v2697_v40, %v2643_v57  ;;  %vm935_vm11 = vweird.f32 %v2643_v57  ;;  %vm997_vm15 = vmor %vm995_vm7, %vm996_vm9 }
  0xdb   : > { %vm936_vm12 = vweird.f32 %v2697_v40  ;;  %v2173_v6 = vpop.eup %2172  ;;  %v993_v0 = vmul.f32 %v2734_v59, %v992_v61  ;;  %vm2903_vm13 = vcmp.eq.f32.partialorder %v999_v62, 8.507059e+37  ;;  %v939_v25 = vand.u32 2147483647, %v2643_v57  ;;  %v488_v62 = vpop.xlane.xlu2 %487 }
  0xdc   : > { %v1002_v58 = vor.u32 1.1754944e-38, %v1001_v63  ;;  %v2908_v20 = vadd.f32 1.0, %v2173_v6  ;;  %v968_v21 = vsel %vm2888_vm10, %v2711_v13, %v964_v4  ;;  %v932_v23 = vsub.f32 1.0, %v931_v35  ;;  %vm937_vm0 = vmor %vm935_vm11, %vm936_vm12 }
  0xdd   : > { %v941_v24 = vand.u32 2147483648, %v2643_v57  ;;  %v2175_v7 = vpop.eup %2174  ;;  %v973_v14 = vsel %vm2877_vm8, %v972_v60, %v968_v21  ;;  %v994_v32 = vadd.f32 %v2734_v59, %v993_v0  ;;  %vm2918_vm14 = vcmp.eq.f32.partialorder %v939_v25, 8.507059e+37  ;;  %v327_v0 = vld [vmem:[%s2453_s26 + $0xf8] sm:$0xff] }
  0xde   : > { %v553_v33 = vadd.f32 %v476_v55, %v324_v5  ;;  %v2177_v41 = vpop.eup %2176  ;;  %2178 = vrcp.f32 %v2908_v20  ;;  %v2924_v13 = vadd.f32 1.0, %v2175_v7  ;;  %1587 = vperm.xlu2 %2074, %v973_v14   ;;  %v933_v43 = vmul.f32 %v2697_v40, %v932_v23 }
  0xdf   : > { %v942_v49 = vor.u32 1.1754944e-38, %v941_v24  ;;  %v2931_v50 = vadd.f32 1.0, %v2177_v41  ;;  %v998_v36 = vsel %vm997_vm15, %v2734_v59, %v994_v32  ;;  %v552_v44 = vadd.f32 %v473_v31, %v323_v26 }
  0xe0   : > { %v2042_v2 = vmul.f32 -1.442695, %v553_v33  ;;  %2180 = vrcp.f32 %v2924_v13  ;;  %v1003_v45 = vsel %vm2903_vm13, %v1002_v58, %v998_v36  ;;  %v934_v42 = vadd.f32 %v2697_v40, %v933_v43  ;;  %v326_v36 = vld [vmem:[%s2453_s26 + $0xf0] sm:$0xff] }
  0xe1   : > { %v554_v3 = vadd.f32 %v479_v19, %v325_v37  ;;  %2182 = vrcp.f32 %v2931_v50  ;;  %1597 = vperm.xlu0 %2072, %v1003_v45   ;;  %v2041_v29 = vmul.f32 -1.442695, %v552_v44  ;;  %v1006_v59 = vmul.f32 %v2763_v27, %v2714_v47  ;;  %v328_v44 = vld [vmem:[%s2453_s26 + $0x100] sm:$0xff] }
  0xe2   : > { %vm1010_vm1 = vweird.f32 %v2714_v47  ;;  %v938_v8 = vsel %vm937_vm0, %v2697_v40, %v934_v42  ;;  %2184 = vpow2.f32 %v2042_v2  ;;  %vm1011_vm2 = vweird.f32 %v2763_v27  ;;  %v482_v2 = vpop.xlane.xlu0 %481 }
  0xe3   : > { %v2043_v17 = vmul.f32 -1.442695, %v554_v3  ;;  %v943_v16 = vsel %vm2918_vm14, %v942_v49, %v938_v8  ;;  %2186 = vpow2.f32 %v2041_v29  ;;  %v1007_v18 = vsub.f32 1.0, %v1006_v59  ;;  %vm2970_vm6 = vmor %vm1010_vm1, %vm1011_vm2 }
  0xe4   : > { %v1014_v57 = vand.u32 2147483647, %v2714_v47  ;;  %v2951_v52 = vpop.eup %2178  ;;  %1577 = vperm.xlu1 %2073, %v943_v16   ;;  %v1016_v53 = vand.u32 2147483648, %v2714_v47  ;;  %v1036_v40 = vmul.f32 %v2792_v48, %v2751_v15  ;;  %vm1040_vm3 = vweird.f32 %v2751_v15 }
  0xe5   : > { %2188 = vpow2.f32 %v2043_v17  ;;  %v1008_v56 = vmul.f32 %v2763_v27, %v1007_v18  ;;  %vm1041_vm5 = vweird.f32 %v2792_v48  ;;  %v1044_v61 = vand.u32 2147483647, %v2751_v15 }
  0xe6   : > { %vm2958_vm4 = vcmp.eq.f32.partialorder %v1014_v57, 8.507059e+37  ;;  %v2964_v63 = vpop.eup %2180  ;;  %v1017_v35 = vor.u32 1.1754944e-38, %v1016_v53  ;;  %v1037_v5 = vsub.f32 1.0, %v1036_v40  ;;  %v1046_v55 = vand.u32 2147483648, %v2751_v15  ;;  %vm1042_vm10 = vmor %vm1040_vm3, %vm1041_vm5 }
  0xe7   : > { %v976_v6 = vmul.f32 %v2749_v12, %v2700_v34  ;;  %v2978_v58 = vpop.eup %2182  ;;  %v1009_v25 = vadd.f32 %v2763_v27, %v1008_v56  ;;  %vm2981_vm7 = vcmp.eq.f32.partialorder %v1044_v61, 8.507059e+37  ;;  %vm980_vm8 = vweird.f32 %v2700_v34 }
  0xe8   : > { %vm981_vm9 = vweird.f32 %v2749_v12  ;;  %v2185_v47 = vpop.eup %2184  ;;  %v1038_v21 = vmul.f32 %v2792_v48, %v1037_v5  ;;  %v1047_v23 = vor.u32 1.1754944e-38, %v1046_v55  ;;  %v984_v26 = vand.u32 2147483647, %v2700_v34 }
  0xe9   : > { %v977_v24 = vsub.f32 1.0, %v976_v6  ;;  %v2187_v31 = vpop.eup %2186  ;;  %v2989_v7 = vadd.f32 1.0, %v2185_v47  ;;  %v1013_v14 = vsel %vm2970_vm6, %v2763_v27, %v1009_v25  ;;  %v986_v32 = vand.u32 2147483648, %v2700_v34  ;;  %vm982_vm12 = vmor %vm980_vm8, %vm981_vm9  ;;  %v497_v34 = vpop.xlane.xlu2 %496 }
  0xea   : > { %v556_v9 = vadd.f32 %v485_v11, %v327_v0  ;;  %v2995_v37 = vadd.f32 1.0, %v2187_v31  ;;  %v1018_v41 = vsel %vm2958_vm4, %v1017_v35, %v1013_v14  ;;  %v1039_v43 = vadd.f32 %v2792_v48, %v1038_v21  ;;  %v330_v21 = vld [vmem:[%s2453_s26 + $0x110] sm:$0xff] }
  0xeb   : > { %v2189_v33 = vpop.eup %2188  ;;  %v978_v49 = vmul.f32 %v2749_v12, %v977_v24  ;;  %2190 = vrcp.f32 %v2989_v7  ;;  %1602 = vperm.xlu2 %2074, %v1018_v41   ;;  %vm3010_vm11 = vcmp.eq.f32.partialorder %v984_v26, 8.507059e+37  ;;  %v987_v42 = vor.u32 1.1754944e-38, %v986_v32  ;;  %v491_v41 = vpop.xlane.xlu0 %490 }
  0xec   : > { %v3004_v45 = vadd.f32 1.0, %v2189_v33  ;;  %2192 = vrcp.f32 %v2995_v37  ;;  %v1043_v3 = vsel %vm1042_vm10, %v2792_v48, %v1039_v43  ;;  %v2045_v59 = vmul.f32 -1.442695, %v556_v9  ;;  %v329_v33 = vld [vmem:[%s2453_s26 + $0x108] sm:$0xff] }
  0xed   : > { %v979_v29 = vadd.f32 %v2749_v12, %v978_v49  ;;  %v1048_v8 = vsel %vm2981_vm7, %v1047_v23, %v1043_v3  ;;  %v555_v15 = vadd.f32 %v482_v2, %v326_v36  ;;  %v557_v17 = vadd.f32 %v488_v62, %v328_v44  ;;  %v494_v23 = vpop.xlane.xlu1 %493  ;;  %v331_v44 = vld [vmem:[%s2453_s26 + $0x118] sm:$0xff] }
  0xee   : > { %2194 = vrcp.f32 %v3004_v45  ;;  %1612 = vperm.xlu0 %2072, %v1048_v8   ;;  %v1051_v48 = vmul.f32 %v2825_v22, %v2773_v39  ;;  %vm1055_vm13 = vweird.f32 %v2773_v39  ;;  %vm1056_vm14 = vweird.f32 %v2825_v22 }
  0xef   : > { %v983_v16 = vsel %vm982_vm12, %v2749_v12, %v979_v29  ;;  %2196 = vpow2.f32 %v2045_v59  ;;  %v2044_v57 = vmul.f32 -1.442695, %v555_v15  ;;  %v2046_v53 = vmul.f32 -1.442695, %v557_v17  ;;  %vm3053_vm2 = vmor %vm1055_vm13, %vm1056_vm14 }
  0xf0   : > { %v988_v18 = vsel %vm3010_vm11, %v987_v42, %v983_v16  ;;  %v1052_v40 = vsub.f32 1.0, %v1051_v48  ;;  %v1059_v56 = vand.u32 2147483647, %v2773_v39  ;;  %v1061_v12 = vand.u32 2147483648, %v2773_v39 }
  0xf1   : > { %1592 = vperm.xlu1 %2073, %v988_v18   ;;  %v1081_v60 = vmul.f32 %v2870_v51, %v2827_v10  ;;  %v3035_v61 = vpop.eup %2190  ;;  %2198 = vpow2.f32 %v2044_v57  ;;  %vm1085_vm15 = vweird.f32 %v2827_v10  ;;  %vm1086_vm0 = vweird.f32 %v2870_v51 }
  0xf2   : > { %v1089_v62 = vand.u32 2147483647, %v2827_v10  ;;  %v3040_v4 = vpop.eup %2192  ;;  %2200 = vpow2.f32 %v2046_v53  ;;  %v1053_v35 = vmul.f32 %v2825_v22, %v1052_v40  ;;  %vm3043_vm1 = vcmp.eq.f32.partialorder %v1059_v56, 8.507059e+37  ;;  %vm1087_vm7 = vmor %vm1085_vm15, %vm1086_vm0  ;;  %v3097_v53 = vpop.xlane.xlu2 %505 }
  0xf3   : > { %v1062_v55 = vor.u32 1.1754944e-38, %v1061_v12  ;;  %v1082_v11 = vsub.f32 1.0, %v1081_v60  ;;  %v1091_v19 = vand.u32 2147483648, %v2827_v10  ;;  %v1021_v47 = vmul.f32 %v2802_v54, %v2766_v28 }
  0xf4   : > { %v3047_v6 = vpop.eup %2194  ;;  %vm3057_vm3 = vcmp.eq.f32.partialorder %v1089_v62, 8.507059e+37  ;;  %v1054_v39 = vadd.f32 %v2825_v22, %v1053_v35  ;;  %vm1025_vm4 = vweird.f32 %v2766_v28  ;;  %vm1026_vm5 = vweird.f32 %v2802_v54 }
  0xf5   : > { %v2197_v24 = vpop.eup %2196  ;;  %v1029_v26 = vand.u32 2147483647, %v2766_v28  ;;  %v1083_v14 = vmul.f32 %v2870_v51, %v1082_v11  ;;  %v1092_v32 = vor.u32 1.1754944e-38, %v1091_v19  ;;  %v1022_v9 = vsub.f32 1.0, %v1021_v47  ;;  %vm1027_vm8 = vmor %vm1025_vm4, %vm1026_vm5 }
  0xf6   : > { %v3069_v31 = vadd.f32 1.0, %v2197_v24  ;;  %v1058_v43 = vsel %vm3053_vm2, %v2825_v22, %v1054_v39  ;;  %v1031_v36 = vand.u32 2147483648, %v2766_v28  ;;  %v559_v2 = vadd.f32 %v494_v23, %v330_v21 }
  0xf7   : > { %vm3076_vm6 = vcmp.eq.f32.partialorder %v1029_v26, 8.507059e+37  ;;  %v2199_v27 = vpop.eup %2198  ;;  %v1063_v42 = vsel %vm3043_vm1, %v1062_v55, %v1058_v43  ;;  %v1084_v3 = vadd.f32 %v2870_v51, %v1083_v14  ;;  %v1023_v29 = vmul.f32 %v2802_v54, %v1022_v9  ;;  %v503_v9 = vpop.xlane.xlu1 %502 }
  0xf8   : > { %2202 = vrcp.f32 %v3069_v31  ;;  %v2201_v59 = vpop.eup %2200  ;;  %v3087_v22 = vadd.f32 1.0, %v2199_v27  ;;  %1617 = vperm.xlu2 %2074, %v1063_v42   ;;  %v1032_v8 = vor.u32 1.1754944e-38, %v1031_v36  ;;  %v2048_v15 = vmul.f32 -1.442695, %v559_v2  ;;  %v332_v2 = vld [vmem:[%s2453_s26 + $0x120] sm:$0xff] }
  0xf9   : > { %v558_v17 = vadd.f32 %v491_v41, %v329_v33  ;;  %v3093_v16 = vadd.f32 1.0, %v2201_v59  ;;  %v1088_v48 = vsel %vm1087_vm7, %v2870_v51, %v1084_v3  ;;  %v1024_v18 = vadd.f32 %v2802_v54, %v1023_v29 }
  0xfa   : > { %v560_v57 = vadd.f32 %v497_v34, %v331_v44  ;;  %2204 = vrcp.f32 %v3087_v22  ;;  %v1093_v40 = vsel %vm3057_vm3, %v1092_v32, %v1088_v48  ;;  %v1096_v56 = vmul.f32 %v2894_v1, %v2850_v38  ;;  %v333_v32 = vld [vmem:[%s2453_s26 + $0x128] sm:$0xff]  ;;  %v500_v44 = vpop.xlane.xlu0 %499 }
  0xfb   : > { %v2047_v10 = vmul.f32 -1.442695, %v558_v17  ;;  %2206 = vrcp.f32 %v3093_v16  ;;  %1627 = vperm.xlu0 %2072, %v1093_v40   ;;  %v1028_v51 = vsel %vm1027_vm8, %v2802_v54, %v1024_v18  ;;  %vm1100_vm9 = vweird.f32 %v2850_v38 }
  0xfc   : > { %v2049_v34 = vmul.f32 -1.442695, %v560_v57  ;;  %v1033_v12 = vsel %vm3076_vm6, %v1032_v8, %v1028_v51  ;;  %2208 = vpow2.f32 %v2048_v15  ;;  %v1097_v60 = vsub.f32 1.0, %v1096_v56  ;;  %v334_v57 = vld [vmem:[%s2453_s26 + $0x130] sm:$0xff] }
  0xfd   : > { %vm1101_vm10 = vweird.f32 %v2894_v1  ;;  %1607 = vperm.xlu1 %2073, %v1033_v12   ;;  %2210 = vpow2.f32 %v2047_v10  ;;  %v1104_v62 = vand.u32 2147483647, %v2850_v38  ;;  %v1106_v35 = vand.u32 2147483648, %v2850_v38 }
  0xfe   : > { %v3114_v28 = vpop.eup %2202  ;;  %v1126_v54 = vmul.f32 %v2951_v52, %v2908_v20  ;;  %2212 = vpow2.f32 %v2049_v34  ;;  %v1098_v5 = vmul.f32 %v2894_v1, %v1097_v60  ;;  %vm1130_vm11 = vweird.f32 %v2908_v20  ;;  %vm3125_vm13 = vmor %vm1100_vm9, %vm1101_vm10 }
  0xff   : > { %vm1131_vm12 = vweird.f32 %v2951_v52  ;;  %vm3129_vm14 = vcmp.eq.f32.partialorder %v1104_v62, 8.507059e+37  ;;  %v1107_v11 = vor.u32 1.1754944e-38, %v1106_v35  ;;  %v1134_v19 = vand.u32 2147483647, %v2908_v20 }
 0x100   : > { %v1127_v25 = vsub.f32 1.0, %v1126_v54  ;;  %v3134_v47 = vpop.eup %2204  ;;  %v1099_v21 = vadd.f32 %v2894_v1, %v1098_v5  ;;  %v1136_v38 = vand.u32 2147483648, %v2908_v20  ;;  %v1066_v23 = vmul.f32 %v2882_v46, %v2840_v30  ;;  %vm1132_vm3 = vmor %vm1130_vm11, %vm1131_vm12 }
 0x101   : > { %vm1070_vm15 = vweird.f32 %v2840_v30  ;;  %v3141_v24 = vpop.eup %2206  ;;  %vm3144_vm0 = vcmp.eq.f32.partialorder %v1134_v19, 8.507059e+37  ;;  %vm1071_vm1 = vweird.f32 %v2882_v46  ;;  %v1074_v14 = vand.u32 2147483647, %v2840_v30 }
 0x102   : > { %v1128_v39 = vmul.f32 %v2951_v52, %v1127_v25  ;;  %v2209_v33 = vpop.eup %2208  ;;  %v1103_v41 = vsel %vm3125_vm13, %v2894_v1, %v1099_v21  ;;  %v1137_v43 = vor.u32 1.1754944e-38, %v1136_v38  ;;  %v1067_v49 = vsub.f32 1.0, %v1066_v23  ;;  %v3165_v1 = vpop.xlane.xlu2 %514  ;;  %vm1072_vm4 = vmor %vm1070_vm15, %vm1071_vm1 }
 0x103   : > { %v1076_v36 = vand.u32 2147483648, %v2840_v30  ;;  %v2211_v27 = vpop.eup %2210  ;;  %v3156_v42 = vadd.f32 1.0, %v2209_v33  ;;  %v1108_v3 = vsel %vm3129_vm14, %v1107_v11, %v1103_v41  ;;  %vm3161_vm2 = vcmp.eq.f32.partialorder %v1074_v14, 8.507059e+37 }
 0x104   : > { %v1129_v29 = vadd.f32 %v2951_v52, %v1128_v39  ;;  %v2213_v8 = vpop.eup %2212  ;;  %v3167_v15 = vadd.f32 1.0, %v2211_v27  ;;  %1632 = vperm.xlu2 %2074, %v1108_v3   ;;  %v1068_v17 = vmul.f32 %v2882_v46, %v1067_v49  ;;  %v562_v18 = vadd.f32 %v503_v9, %v333_v32 }
 0x105   : > { %v1077_v48 = vor.u32 1.1754944e-38, %v1076_v36  ;;  %2214 = vrcp.f32 %v3156_v42  ;;  %v3176_v40 = vadd.f32 1.0, %v2213_v8  ;;  %v561_v56 = vadd.f32 %v500_v44, %v332_v2  ;;  %v336_v36 = vld [vmem:[%s2453_s26 + $0x140] sm:$0xff]  ;;  %v512_v2 = vpop.xlane.xlu1 %511  ;;  %v335_v8 = vld [vmem:[%s2453_s26 + $0x138] sm:$0xff] }
 0x106   : > { %v1133_v10 = vsel %vm1132_vm3, %v2951_v52, %v1129_v29  ;;  %2216 = vrcp.f32 %v3167_v15  ;;  %v1069_v20 = vadd.f32 %v2882_v46, %v1068_v17  ;;  %v2051_v34 = vmul.f32 -1.442695, %v562_v18  ;;  %v509_v17 = vpop.xlane.xlu0 %508 }
 0x107   : > { %v1138_v51 = vsel %vm3144_vm0, %v1137_v43, %v1133_v10  ;;  %2218 = vrcp.f32 %v3176_v40  ;;  %v2050_v12 = vmul.f32 -1.442695, %v561_v56  ;;  %v563_v52 = vadd.f32 %v3097_v53, %v334_v57  ;;  %v337_v56 = vld [vmem:[%s2453_s26 + $0x148] sm:$0xff] }
 0x108   : > { %1642 = vperm.xlu0 %2072, %v1138_v51   ;;  %v1141_v60 = vmul.f32 %v2978_v58, %v2931_v50  ;;  %v1073_v62 = vsel %vm1072_vm4, %v2882_v46, %v1069_v20  ;;  %2220 = vpow2.f32 %v2051_v34  ;;  %vm1145_vm5 = vweird.f32 %v2931_v50 }
 0x109   : > { %vm1146_vm6 = vweird.f32 %v2978_v58  ;;  %v1078_v35 = vsel %vm3161_vm2, %v1077_v48, %v1073_v62  ;;  %2222 = vpow2.f32 %v2050_v12  ;;  %v2052_v54 = vmul.f32 -1.442695, %v563_v52 }
 0x10a   : > { %v1142_v30 = vsub.f32 1.0, %v1141_v60  ;;  %1622 = vperm.xlu1 %2073, %v1078_v35   ;;  %v1149_v5 = vand.u32 2147483647, %v2931_v50  ;;  %v1151_v53 = vand.u32 2147483648, %v2931_v50  ;;  %v1171_v55 = vmul.f32 %v3035_v61, %v2989_v7  ;;  %vm3212_vm9 = vmor %vm1145_vm5, %vm1146_vm6  ;;  %v3231_v9 = vpop.xlane.xlu2 %523 }
 0x10b   : > { %vm1175_vm7 = vweird.f32 %v2989_v7  ;;  %v3201_v46 = vpop.eup %2214  ;;  %2224 = vpow2.f32 %v2052_v54  ;;  %vm1176_vm8 = vweird.f32 %v3035_v61  ;;  %v1179_v11 = vand.u32 2147483647, %v2989_v7 }
 0x10c   : > { %v1143_v0 = vmul.f32 %v2978_v58, %v1142_v30  ;;  %v3206_v25 = vpop.eup %2216  ;;  %vm3216_vm10 = vcmp.eq.f32.partialorder %v1149_v5, 8.507059e+37  ;;  %v1152_v38 = vor.u32 1.1754944e-38, %v1151_v53  ;;  %v1172_v23 = vsub.f32 1.0, %v1171_v55  ;;  %vm1177_vm15 = vmor %vm1175_vm7, %vm1176_vm8 }
 0x10d   : > { %v1181_v39 = vand.u32 2147483648, %v2989_v7  ;;  %v3221_v26 = vpop.eup %2218  ;;  %vm3224_vm11 = vcmp.eq.f32.partialorder %v1179_v11, 8.507059e+37  ;;  %v1111_v50 = vmul.f32 %v2964_v63, %v2924_v13  ;;  %vm1115_vm12 = vweird.f32 %v2924_v13 }
 0x10e   : > { %v1144_v14 = vadd.f32 %v2978_v58, %v1143_v0  ;;  %v2221_v33 = vpop.eup %2220  ;;  %v1173_v41 = vmul.f32 %v3035_v61, %v1172_v23  ;;  %vm1116_vm13 = vweird.f32 %v2964_v63  ;;  %v1119_v49 = vand.u32 2147483647, %v2924_v13 }
 0x10f   : > { %v1182_v43 = vor.u32 1.1754944e-38, %v1181_v39  ;;  %v2223_v44 = vpop.eup %2222  ;;  %v3237_v27 = vadd.f32 1.0, %v2221_v33  ;;  %v1112_v29 = vsub.f32 1.0, %v1111_v50  ;;  %v1121_v59 = vand.u32 2147483648, %v2924_v13  ;;  %vm1117_vm0 = vmor %vm1115_vm12, %vm1116_vm13 }
 0x110   : > { %v1148_v3 = vsel %vm3212_vm9, %v2978_v58, %v1144_v14  ;;  %v3244_v48 = vadd.f32 1.0, %v2223_v44  ;;  %v1174_v57 = vadd.f32 %v3035_v61, %v1173_v41  ;;  %vm3249_vm14 = vcmp.eq.f32.partialorder %v1119_v49, 8.507059e+37  ;;  %v521_v49 = vpop.xlane.xlu1 %520 }
 0x111   : > { %v1153_v18 = vsel %vm3216_vm10, %v1152_v38, %v1148_v3  ;;  %v2225_v51 = vpop.eup %2224  ;;  %2226 = vrcp.f32 %v3237_v27  ;;  %v1113_v58 = vmul.f32 %v2964_v63, %v1112_v29  ;;  %v1122_v20 = vor.u32 1.1754944e-38, %v1121_v59 }
 0x112   : > { %1647 = vperm.xlu2 %2074, %v1153_v18   ;;  %v565_v34 = vadd.f32 %v512_v2, %v336_v36  ;;  %2228 = vrcp.f32 %v3244_v48  ;;  %v3261_v12 = vadd.f32 1.0, %v2225_v51  ;;  %v1178_v52 = vsel %vm1177_vm15, %v3035_v61, %v1174_v57 }
 0x113   : > { %v564_v60 = vadd.f32 %v509_v17, %v335_v8  ;;  %v1183_v62 = vsel %vm3224_vm11, %v1182_v43, %v1178_v52  ;;  %v1114_v35 = vadd.f32 %v2964_v63, %v1113_v58  ;;  %v566_v7 = vadd.f32 %v3165_v1, %v337_v56  ;;  %v3278_v1 = vpop.permute.xlu2 %1527  ;;  %v339_v43 = vld [vmem:[%s2453_s26 + $0x158] sm:$0xff] }
 0x114   : > { %v2054_v54 = vmul.f32 -1.442695, %v565_v34  ;;  %2230 = vrcp.f32 %v3261_v12  ;;  %1657 = vperm.xlu0 %2072, %v1183_v62   ;;  %v1186_v61 = vmul.f32 %v3047_v6, %v3004_v45  ;;  %vm1190_vm1 = vweird.f32 %v3004_v45  ;;  %v518_v62 = vpop.xlane.xlu0 %517 }
 0x115   : > { %v2053_v30 = vmul.f32 -1.442695, %v564_v60  ;;  %v1118_v5 = vsel %vm1117_vm0, %v2964_v63, %v1114_v35  ;;  %v2055_v53 = vmul.f32 -1.442695, %v566_v7  ;;  %vm1191_vm2 = vweird.f32 %v3047_v6  ;;  %v338_v60 = vld [vmem:[%s2453_s26 + $0x150] sm:$0xff]  ;;  %v340_v35 = vld [vmem:[%s2453_s26 + $0x160] sm:$0xff] }
 0x116   : > { %2232 = vpow2.f32 %v2054_v54  ;;  %v1123_v55 = vsel %vm3249_vm14, %v1122_v20, %v1118_v5  ;;  %v1187_v13 = vsub.f32 1.0, %v1186_v61  ;;  %v1194_v0 = vand.u32 2147483647, %v3004_v45  ;;  %vm3302_vm6 = vmor %vm1190_vm1, %vm1191_vm2 }
 0x117   : > { %2234 = vpow2.f32 %v2053_v30  ;;  %v3283_v11 = vpop.eup %2226  ;;  %1637 = vperm.xlu1 %2073, %v1123_v55   ;;  %v1196_v63 = vand.u32 2147483648, %v3004_v45  ;;  %v1216_v19 = vmul.f32 %v3114_v28, %v3069_v31  ;;  %vm1220_vm3 = vweird.f32 %v3069_v31 }
 0x118   : > { %2236 = vpow2.f32 %v2055_v53  ;;  %v3289_v21 = vpop.eup %2228  ;;  %v1188_v38 = vmul.f32 %v3047_v6, %v1187_v13  ;;  %vm3292_vm4 = vcmp.eq.f32.partialorder %v1194_v0, 8.507059e+37  ;;  %vm1221_vm5 = vweird.f32 %v3114_v28 }
 0x119   : > { %v1224_v39 = vand.u32 2147483647, %v3069_v31  ;;  %v1197_v32 = vor.u32 1.1754944e-38, %v1196_v63  ;;  %v1217_v50 = vsub.f32 1.0, %v1216_v19  ;;  %v1226_v33 = vand.u32 2147483648, %v3069_v31  ;;  %vm1222_vm10 = vmor %vm1220_vm3, %vm1221_vm5 }
 0x11a   : > { %v1156_v41 = vmul.f32 %v3040_v4, %v2995_v37  ;;  %v3310_v36 = vpop.eup %2230  ;;  %v1189_v2 = vadd.f32 %v3047_v6, %v1188_v38  ;;  %vm1160_vm8 = vweird.f32 %v2995_v37  ;;  %vm1161_vm9 = vweird.f32 %v3040_v4 }
 0x11b   : > { %vm3313_vm7 = vcmp.eq.f32.partialorder %v1224_v39, 8.507059e+37  ;;  %v1218_v3 = vmul.f32 %v3114_v28, %v1217_v50  ;;  %v1227_v29 = vor.u32 1.1754944e-38, %v1226_v33  ;;  %v1164_v8 = vand.u32 2147483647, %v2995_v37  ;;  %v3335_v54 = vpop.permute.xlu2 %1532  ;;  %vm1162_vm12 = vmor %vm1160_vm8, %vm1161_vm9 }
 0x11c   : > { %v2233_v45 = vpop.eup %2232  ;;  %v1157_v59 = vsub.f32 1.0, %v1156_v41  ;;  %v1193_v57 = vsel %vm3302_vm6, %v3047_v6, %v1189_v2  ;;  %v1166_v10 = vand.u32 2147483648, %v2995_v37  ;;  %v568_v56 = vadd.f32 %v521_v49, %v339_v43 }
 0x11d   : > { %v2235_v17 = vpop.eup %2234  ;;  %v3321_v18 = vadd.f32 1.0, %v2233_v45  ;;  %v1198_v20 = vsel %vm3292_vm4, %v1197_v32, %v1193_v57  ;;  %v1219_v34 = vadd.f32 %v3114_v28, %v1218_v3  ;;  %vm3344_vm11 = vcmp.eq.f32.partialorder %v1164_v8, 8.507059e+37 }
 0x11e   : > { %v2237_v51 = vpop.eup %2236  ;;  %v3327_v58 = vadd.f32 1.0, %v2235_v17  ;;  %v1158_v52 = vmul.f32 %v3040_v4, %v1157_v59  ;;  %1662 = vperm.xlu2 %2074, %v1198_v20   ;;  %v1167_v30 = vor.u32 1.1754944e-38, %v1166_v10  ;;  %v2057_v53 = vmul.f32 -1.442695, %v568_v56  ;;  %v1429_v56 = vld [vmem:[%s3382_s30 + $0x20] sm:$0xff] }
 0x11f   : > { %2238 = vrcp.f32 %v3321_v18  ;;  %v3338_v6 = vadd.f32 1.0, %v2237_v51  ;;  %v1223_v61 = vsel %vm1222_vm10, %v3114_v28, %v1219_v34  ;;  %v567_v31 = vadd.f32 %v518_v62, %v338_v60  ;;  %v1430_v51 = vld [vmem:[%s3382_s30 + $0x28] sm:$0xff] }
 0x120   : > { %2240 = vrcp.f32 %v3327_v58  ;;  %v1159_v5 = vadd.f32 %v3040_v4, %v1158_v52  ;;  %v1228_v55 = vsel %vm3313_vm7, %v1227_v29, %v1223_v61  ;;  %v569_v13 = vadd.f32 %v3231_v9, %v340_v35 }
 0x121   : > { %2242 = vrcp.f32 %v3338_v6  ;;  %1672 = vperm.xlu0 %2072, %v1228_v55   ;;  %v1231_v28 = vmul.f32 %v3141_v24, %v3093_v16  ;;  %vm1235_vm13 = vweird.f32 %v3093_v16  ;;  %v2056_v19 = vmul.f32 -1.442695, %v567_v31 }
 0x122   : > { %v1163_v0 = vsel %vm1162_vm12, %v3040_v4, %v1159_v5  ;;  %2244 = vpow2.f32 %v2057_v53  ;;  %v2058_v37 = vmul.f32 -1.442695, %v569_v13  ;;  %vm1236_vm14 = vweird.f32 %v3141_v24 }
 0x123   : > { %v1168_v63 = vsel %vm3344_vm11, %v1167_v30, %v1163_v0  ;;  %v1232_v9 = vsub.f32 1.0, %v1231_v28  ;;  %v1239_v38 = vand.u32 2147483647, %v3093_v16  ;;  %v1241_v4 = vand.u32 2147483648, %v3093_v16  ;;  %v3390_v41 = vpop.permute.xlu2 %1542  ;;  %vm3398_vm2 = vmor %vm1235_vm13, %vm1236_vm14 }
 0x124   : > { %1652 = vperm.xlu1 %2073, %v1168_v63   ;;  %v1261_v23 = vmul.f32 %v3201_v46, %v3156_v42  ;;  %2246 = vpow2.f32 %v2056_v19  ;;  %vm1265_vm15 = vweird.f32 %v3156_v42  ;;  %v1269_v14 = vand.u32 2147483647, %v3156_v42 }
 0x125   : > { %v3371_v39 = vpop.eup %2238  ;;  %2248 = vpow2.f32 %v2058_v37  ;;  %v1233_v50 = vmul.f32 %v3141_v24, %v1232_v9  ;;  %vm3385_vm0 = vcmp.eq.f32.partialorder %v1239_v38, 8.507059e+37  ;;  %vm1266_vm1 = vweird.f32 %v3201_v46  ;;  %v1436_v38 = vld [vmem:[%s3382_s30 + $0x58] sm:$0xff] }
 0x126   : > { %v3375_v32 = vpop.eup %2240  ;;  %v1242_v2 = vor.u32 1.1754944e-38, %v1241_v4  ;;  %v1262_v44 = vsub.f32 1.0, %v1261_v23  ;;  %v1271_v45 = vand.u32 2147483648, %v3156_v42  ;;  %v1201_v3 = vmul.f32 %v3134_v47, %v3087_v22  ;;  %vm1267_vm8 = vmor %vm1265_vm15, %vm1266_vm1 }
 0x127   : > { %v3392_v43 = vpop.eup %2242  ;;  %v1234_v59 = vadd.f32 %v3141_v24, %v1233_v50  ;;  %vm3406_vm3 = vcmp.eq.f32.partialorder %v1269_v14, 8.507059e+37  ;;  %vm1205_vm4 = vweird.f32 %v3087_v22  ;;  %v1209_v16 = vand.u32 2147483647, %v3087_v22 }
 0x128   : > { %v2245_v29 = vpop.eup %2244  ;;  %v1263_v57 = vmul.f32 %v3201_v46, %v1262_v44  ;;  %v1202_v10 = vsub.f32 1.0, %v1201_v3  ;;  %vm1206_vm5 = vweird.f32 %v3134_v47  ;;  %v1272_v34 = vor.u32 1.1754944e-38, %v1271_v45  ;;  %v1431_v44 = vld [vmem:[%s3382_s30 + $0x30] sm:$0xff]  ;;  %v1432_v45 = vld [vmem:[%s3382_s30 + $0x38] sm:$0xff] }
 0x129   : > { %v3412_v17 = vadd.f32 1.0, %v2245_v29  ;;  %v1238_v20 = vsel %vm3398_vm2, %v3141_v24, %v1234_v59  ;;  %vm3421_vm6 = vcmp.eq.f32.partialorder %v1209_v16, 8.507059e+37  ;;  %v1211_v60 = vand.u32 2147483648, %v3087_v22  ;;  %vm1207_vm9 = vmor %vm1205_vm4, %vm1206_vm5 }
 0x12a   : > { %v2247_v62 = vpop.eup %2246  ;;  %v1243_v35 = vsel %vm3385_vm0, %v1242_v2, %v1238_v20  ;;  %v1264_v7 = vadd.f32 %v3201_v46, %v1263_v57  ;;  %v1203_v24 = vmul.f32 %v3134_v47, %v1202_v10  ;;  %vm1831_vm7 = vcmask 556032   ;;  %v3506_v57 = vpop.permute.xlu0 %1517 }
 0x12b   : > { %v2249_v30 = vpop.eup %2248  ;;  %2250 = vrcp.f32 %v3412_v17  ;;  %v3438_v61 = vadd.f32 1.0, %v2247_v62  ;;  %1677 = vperm.xlu2 %2074, %v1243_v35   ;;  %v1744_v5 = vmul.f32 %v3278_v1, %v1429_v56  ;;  %v1745_v53 = vmul.f32 %v3278_v1, %v1430_v51  ;;  %v3466_v19 = vpop.permute.xlu2 %1557 }
 0x12c   : > { %v3446_v55 = vadd.f32 1.0, %v2249_v30  ;;  %v1268_v31 = vsel %vm1267_vm8, %v3201_v46, %v1264_v7  ;;  %v1204_v13 = vadd.f32 %v3134_v47, %v1203_v24  ;;  %v1276_v0 = vmul.f32 %v3221_v26, %v3176_v40  ;;  %v3532_v24 = vpop.permute.xlu1 %1522 }
 0x12d   : > { %2252 = vrcp.f32 %v3438_v61  ;;  %v1273_v42 = vsel %vm3406_vm3, %v1272_v34, %v1268_v31  ;;  %v1212_v1 = vor.u32 1.1754944e-38, %v1211_v60  ;;  %1835 = vst [vmem:[%s3431_s7 + $0x20] sm:$0xff] %v1744_v5  ;;  %vm1280_vm10 = vweird.f32 %v3176_v40 }
 0x12e   : > { %1687 = vperm.xlu0 %2072, %v1273_v42   ;;  %v1208_v46 = vsel %vm1207_vm9, %v3134_v47, %v1204_v13  ;;  %1836 = vst.msk [vmem:[%s3431_s7 + $0x28] sm:$0xff] %vm1831_vm7, %v1745_v53  ;;  %v1277_v28 = vsub.f32 1.0, %v1276_v0  ;;  %vm1281_vm11 = vweird.f32 %v3221_v26  ;;  %v1284_v63 = vand.u32 2147483647, %v3176_v40 }
 0x12f   : > { %2254 = vrcp.f32 %v3446_v55  ;;  %v1213_v22 = vsel %vm3421_vm6, %v1212_v1, %v1208_v46  ;;  %v1286_v37 = vand.u32 2147483648, %v3176_v40  ;;  %v1306_v47 = vmul.f32 %v3283_v11, %v3237_v27  ;;  %vm3485_vm14 = vmor %vm1280_vm10, %vm1281_vm11 }
 0x130   : > { %1667 = vperm.xlu1 %2073, %v1213_v22   ;;  %v1278_v9 = vmul.f32 %v3221_v26, %v1277_v28  ;;  %vm3475_vm12 = vcmp.eq.f32.partialorder %v1284_v63, 8.507059e+37  ;;  %vm1310_vm13 = vweird.f32 %v3237_v27  ;;  %v1314_v4 = vand.u32 2147483647, %v3237_v27 }
 0x131   : > { %v3481_v23 = vpop.eup %2250  ;;  %v1287_v50 = vor.u32 1.1754944e-38, %v1286_v37  ;;  %v1307_v33 = vsub.f32 1.0, %v1306_v47  ;;  %v1316_v49 = vand.u32 2147483648, %v3237_v27  ;;  %v1246_v2 = vmul.f32 %v3206_v25, %v3167_v15  ;;  %v1435_v37 = vld [vmem:[%s3382_s30 + $0x50] sm:$0xff] }
 0x132   : > { %v1279_v3 = vadd.f32 %v3221_v26, %v1278_v9  ;;  %vm1311_vm15 = vweird.f32 %v3283_v11  ;;  %vm3496_vm0 = vcmp.eq.f32.partialorder %v1314_v4, 8.507059e+37  ;;  %vm1250_vm1 = vweird.f32 %v3167_v15  ;;  %v3574_v4 = vpop.permute.xlu0 %1552 }
 0x133   : > { %v3501_v40 = vpop.eup %2252  ;;  %v1308_v59 = vmul.f32 %v3283_v11, %v1307_v33  ;;  %v1247_v8 = vsub.f32 1.0, %v1246_v2  ;;  %vm1251_vm2 = vweird.f32 %v3206_v25  ;;  %v1254_v16 = vand.u32 2147483647, %v3167_v15  ;;  %vm1312_vm3 = vmor %vm1310_vm13, %vm1311_vm15  ;;  %v3540_v31 = vpop.permute.xlu2 %1572 }
 0x134   : > { %v1283_v10 = vsel %vm3485_vm14, %v3221_v26, %v1279_v3  ;;  %v1256_v56 = vand.u32 2147483648, %v3167_v15  ;;  %v1746_v51 = vmul.f32 %v3335_v54, %v1431_v44  ;;  %v1747_v20 = vmul.f32 %v3335_v54, %v1432_v45  ;;  %vm1252_vm6 = vmor %vm1250_vm1, %vm1251_vm2 }
 0x135   : > { %v3514_v34 = vpop.eup %2254  ;;  %v1288_v52 = vsel %vm3475_vm12, %v1287_v50, %v1283_v10  ;;  %v1309_v60 = vadd.f32 %v3283_v11, %v1308_v59  ;;  %v1317_v62 = vor.u32 1.1754944e-38, %v1316_v49  ;;  %v1248_v35 = vmul.f32 %v3206_v25, %v1247_v8  ;;  %v3591_v8 = vpop.permute.xlu1 %1537 }
 0x136   : > { %1692 = vperm.xlu2 %2074, %v1288_v52   ;;  %vm3524_vm4 = vcmp.eq.f32.partialorder %v1254_v16, 8.507059e+37  ;;  %v1257_v54 = vor.u32 1.1754944e-38, %v1256_v56  ;;  %1837 = vst [vmem:[%s3431_s7 + $0x30] sm:$0xff] %v1746_v51  ;;  %v1321_v7 = vmul.f32 %v3310_v36, %v3261_v12  ;;  %vm1325_vm5 = vweird.f32 %v3261_v12 }
 0x137   : > { %v1313_v30 = vsel %vm1312_vm3, %v3283_v11, %v1309_v60  ;;  %v1249_v5 = vadd.f32 %v3206_v25, %v1248_v35  ;;  %1838 = vst.msk [vmem:[%s3431_s7 + $0x38] sm:$0xff] %vm1831_vm7, %v1747_v20  ;;  %v1329_v27 = vand.u32 2147483647, %v3261_v12  ;;  %v1331_v53 = vand.u32 2147483648, %v3261_v12 }
 0x138   : > { %v1318_v13 = vsel %vm3496_vm0, %v1317_v62, %v1313_v30  ;;  %v1322_v11 = vsub.f32 1.0, %v1321_v7  ;;  %vm1326_vm8 = vweird.f32 %v3310_v36  ;;  %v1351_v0 = vmul.f32 %v3371_v39, %v3321_v18 }
 0x139   : > { %1702 = vperm.xlu0 %2072, %v1318_v13   ;;  %v1253_v42 = vsel %vm1252_vm6, %v3206_v25, %v1249_v5  ;;  %vm3552_vm9 = vcmp.eq.f32.partialorder %v1329_v27, 8.507059e+37  ;;  %v1332_v46 = vor.u32 1.1754944e-38, %v1331_v53  ;;  %vm1355_vm10 = vweird.f32 %v3321_v18  ;;  %vm3564_vm11 = vmor %vm1325_vm5, %vm1326_vm8 }
 0x13a   : > { %v1258_v15 = vsel %vm3524_vm4, %v1257_v54, %v1253_v42  ;;  %v1323_v28 = vmul.f32 %v3310_v36, %v1322_v11  ;;  %v1352_v63 = vsub.f32 1.0, %v1351_v0  ;;  %v1359_v22 = vand.u32 2147483647, %v3321_v18  ;;  %v1441_v11 = vld [vmem:[%s3382_s30 + $0x80] sm:$0xff]  ;;  %v1442_v0 = vld [vmem:[%s3382_s30 + $0x88] sm:$0xff]  ;;  %v3655_v1 = vpop.permute.xlu0 %1567 }
 0x13b   : > { %1682 = vperm.xlu1 %2073, %v1258_v15   ;;  %vm1356_vm12 = vweird.f32 %v3371_v39  ;;  %v1361_v47 = vand.u32 2147483648, %v3321_v18  ;;  %v1291_v9 = vmul.f32 %v3289_v21, %v3244_v48  ;;  %vm1295_vm13 = vweird.f32 %v3244_v48  ;;  %v3617_v62 = vpop.permute.xlu2 %1587 }
 0x13c   : > { %v1324_v14 = vadd.f32 %v3310_v36, %v1323_v28  ;;  %v1353_v12 = vmul.f32 %v3371_v39, %v1352_v63  ;;  %vm1296_vm14 = vweird.f32 %v3289_v21  ;;  %v1299_v50 = vand.u32 2147483647, %v3244_v48  ;;  %vm1357_vm0 = vmor %vm1355_vm10, %vm1356_vm12  ;;  %v1425_v63 = vld [vmem:[%s3382_s30] sm:$0xff] }
 0x13d   : > { %vm3580_vm15 = vcmp.eq.f32.partialorder %v1359_v22, 8.507059e+37  ;;  %v1362_v49 = vor.u32 1.1754944e-38, %v1361_v47  ;;  %v1292_v2 = vsub.f32 1.0, %v1291_v9  ;;  %v1750_v44 = vmul.f32 %v3390_v41, %v1435_v37  ;;  %vm1297_vm4 = vmor %vm1295_vm13, %vm1296_vm14  ;;  %v1426_v22 = vld [vmem:[%s3382_s30 + $0x8] sm:$0xff] }
 0x13e   : > { %v1328_v45 = vsel %vm3564_vm11, %v3310_v36, %v1324_v14  ;;  %v1354_v3 = vadd.f32 %v3371_v39, %v1353_v12  ;;  %v1301_v29 = vand.u32 2147483648, %v3244_v48  ;;  %v1751_v59 = vmul.f32 %v3390_v41, %v1436_v38  ;;  %v3667_v38 = vpop.permute.xlu1 %1547  ;;  %v1448_v36 = vld [vmem:[%s3382_s30 + $0xb8] sm:$0xff] }
 0x13f   : > { %v1333_v16 = vsel %vm3552_vm9, %v1332_v46, %v1328_v45  ;;  %v1293_v10 = vmul.f32 %v3289_v21, %v1292_v2  ;;  %vm3600_vm1 = vcmp.eq.f32.partialorder %v1299_v50, 8.507059e+37  ;;  %1841 = vst [vmem:[%s3431_s7 + $0x50] sm:$0xff] %v1750_v44  ;;  %v1366_v41 = vmul.f32 %v3392_v43, %v3338_v6 }
 0x140   : > { %1707 = vperm.xlu2 %2074, %v1333_v16   ;;  %v1358_v56 = vsel %vm1357_vm0, %v3371_v39, %v1354_v3  ;;  %1842 = vst.msk [vmem:[%s3431_s7 + $0x58] sm:$0xff] %vm1831_vm7, %v1751_v59  ;;  %vm1370_vm2 = vweird.f32 %v3338_v6  ;;  %vm1371_vm3 = vweird.f32 %v3392_v43  ;;  %v1374_v18 = vand.u32 2147483647, %v3338_v6  ;;  %v1447_v59 = vld [vmem:[%s3382_s30 + $0xb0] sm:$0xff] }
 0x141   : > { %v1363_v51 = vsel %vm3580_vm15, %v1362_v49, %v1358_v56  ;;  %v1294_v20 = vadd.f32 %v3289_v21, %v1293_v10  ;;  %v1367_v52 = vsub.f32 1.0, %v1366_v41  ;;  %v1376_v60 = vand.u32 2147483648, %v3338_v6  ;;  %vm3639_vm8 = vmor %vm1370_vm2, %vm1371_vm3  ;;  %v1427_v41 = vld [vmem:[%s3382_s30 + $0x10] sm:$0xff]  ;;  %v1428_v56 = vld [vmem:[%s3382_s30 + $0x18] sm:$0xff] }
 0x142   : > { %1717 = vperm.xlu0 %2072, %v1363_v51   ;;  %v1302_v39 = vor.u32 1.1754944e-38, %v1301_v29  ;;  %vm3623_vm5 = vcmp.eq.f32.partialorder %v1374_v18, 8.507059e+37  ;;  %v1396_v26 = vmul.f32 %v3481_v23, %v3412_v17  ;;  %vm1400_vm6 = vweird.f32 %v3412_v17 }
 0x143   : > { %v1298_v54 = vsel %vm1297_vm4, %v3289_v21, %v1294_v20  ;;  %v1368_v7 = vmul.f32 %v3392_v43, %v1367_v52  ;;  %v1377_v30 = vor.u32 1.1754944e-38, %v1376_v60  ;;  %v1404_v5 = vand.u32 2147483647, %v3412_v17  ;;  %v1450_v20 = vld [vmem:[%s3382_s30 + $0xc8] sm:$0xff]  ;;  %v1457_v52 = vld [vmem:[%s3382_s30 + $0x100] sm:$0xff] }
 0x144   : > { %v1303_v48 = vsel %vm3600_vm1, %v1302_v39, %v1298_v54  ;;  %v1397_v53 = vsub.f32 1.0, %v1396_v26  ;;  %v1406_v21 = vand.u32 2147483648, %v3412_v17  ;;  %v1336_v13 = vmul.f32 %v3375_v32, %v3327_v58  ;;  %v1454_v54 = vld [vmem:[%s3382_s30 + $0xe8] sm:$0xff] }
 0x145   : > { %1697 = vperm.xlu1 %2073, %v1303_v48   ;;  %v1369_v42 = vadd.f32 %v3392_v43, %v1368_v7  ;;  %vm1401_vm9 = vweird.f32 %v3481_v23  ;;  %vm3650_vm10 = vcmp.eq.f32.partialorder %v1404_v5, 8.507059e+37  ;;  %vm1340_vm11 = vweird.f32 %v3327_v58  ;;  %v3703_v16 = vpop.permute.xlu2 %1602  ;;  %v1433_v48 = vld [vmem:[%s3382_s30 + $0x40] sm:$0xff] }
 0x146   : > { %v1398_v46 = vmul.f32 %v3481_v23, %v1397_v53  ;;  %v1407_v15 = vor.u32 1.1754944e-38, %v1406_v21  ;;  %v1337_v28 = vsub.f32 1.0, %v1336_v13  ;;  %vm1341_vm12 = vweird.f32 %v3375_v32  ;;  %vm1402_vm13 = vmor %vm1400_vm6, %vm1401_vm9 }
 0x147   : > { %v1373_v37 = vsel %vm3639_vm8, %v3392_v43, %v1369_v42  ;;  %v1346_v25 = vand.u32 2147483648, %v3327_v58  ;;  %v1756_v47 = vmul.f32 %v3466_v19, %v1441_v11  ;;  %v1757_v9 = vmul.f32 %v3466_v19, %v1442_v0  ;;  %vm3695_vm0 = vmor %vm1340_vm11, %vm1341_vm12  ;;  %v3738_v27 = vpop.permute.xlu0 %1582  ;;  %v1439_v0 = vld [vmem:[%s3382_s30 + $0x70] sm:$0xff] }
 0x148   : > { %v1378_v14 = vsel %vm3623_vm5, %v1377_v30, %v1373_v37  ;;  %v1399_v12 = vadd.f32 %v3481_v23, %v1398_v46  ;;  %v1338_v50 = vmul.f32 %v3375_v32, %v1337_v28  ;;  %v1344_v33 = vand.u32 2147483647, %v3327_v58  ;;  %v1440_v28 = vld [vmem:[%s3382_s30 + $0x78] sm:$0xff] }
 0x149   : > { %1722 = vperm.xlu2 %2074, %v1378_v14   ;;  %v1347_v43 = vor.u32 1.1754944e-38, %v1346_v25  ;;  %1847 = vst [vmem:[%s3431_s7 + $0x80] sm:$0xff] %v1756_v47  ;;  %v1740_v19 = vmul.f32 %v3506_v57, %v1425_v63  ;;  %v1741_v49 = vmul.f32 %v3506_v57, %v1426_v22  ;;  %v1411_v2 = vmul.f32 %v3514_v34, %v3446_v55  ;;  %v1459_v63 = vld [vmem:[%s3382_s30 + $0x110] sm:$0xff]  ;;  %v1438_v14 = vld [vmem:[%s3382_s30 + $0x68] sm:$0xff] }
 0x14a   : > { %v1403_v44 = vsel %vm1402_vm13, %v3481_v23, %v1399_v12  ;;  %v1339_v45 = vadd.f32 %v3375_v32, %v1338_v50  ;;  %1848 = vst.msk [vmem:[%s3431_s7 + $0x88] sm:$0xff] %vm1831_vm7, %v1757_v9  ;;  %vm1415_vm14 = vweird.f32 %v3446_v55  ;;  %vm1416_vm15 = vweird.f32 %v3514_v34  ;;  %v1563_v42 = vpop.permute.xlu1 %1562  ;;  %v1445_v50 = vld [vmem:[%s3382_s30 + $0xa0] sm:$0xff] }
 0x14b   : > { %v1408_v17 = vsel %vm3650_vm10, %v1407_v15, %v1403_v44  ;;  %1830 = vst [vmem:[%s3431_s7] sm:$0xff] %v1740_v19  ;;  %v1412_v57 = vsub.f32 1.0, %v1411_v2  ;;  %v1419_v3 = vand.u32 2147483647, %v3446_v55  ;;  %v1421_v29 = vand.u32 2147483648, %v3446_v55  ;;  %vm3726_vm4 = vmor %vm1415_vm14, %vm1416_vm15  ;;  %v1465_v19 = vld [vmem:[%s3382_s30 + $0x140] sm:$0xff]  ;;  %v1466_v44 = vld [vmem:[%s3382_s30 + $0x148] sm:$0xff] }
 0x14c   : > { %1732 = vperm.xlu0 %2072, %v1408_v17   ;;  %v1343_v10 = vsel %vm3695_vm0, %v3375_v32, %v1339_v45  ;;  %vm1345_vm1 = vcmp.eq.f32.partialorder %v1344_v33, 8.507059e+37  ;;  %1832 = vst.msk [vmem:[%s3431_s7 + $0x8] sm:$0xff] %vm1831_vm7, %v1741_v49  ;;  %v1381_v58 = vmul.f32 %v3501_v40, %v3438_v61  ;;  %vm1385_vm3 = vweird.f32 %v3438_v61  ;;  %v1453_v32 = vld [vmem:[%s3382_s30 + $0xe0] sm:$0xff]  ;;  %v1446_v33 = vld [vmem:[%s3382_s30 + $0xa8] sm:$0xff]  ;;  %v1443_v17 = vld [vmem:[%s3382_s30 + $0x90] sm:$0xff] }
 0x14d   : > { %v1348_v18 = vsel %vm1345_vm1, %v1347_v43, %v1343_v10  ;;  %v1413_v51 = vmul.f32 %v3514_v34, %v1412_v57  ;;  %vm3716_vm2 = vcmp.eq.f32.partialorder %v1419_v3, 8.507059e+37  ;;  %v1422_v60 = vor.u32 1.1754944e-38, %v1421_v29  ;;  %v1444_v57 = vld [vmem:[%s3382_s30 + $0x98] sm:$0xff]  ;;  %v1451_v29 = vld [vmem:[%s3382_s30 + $0xd0] sm:$0xff] }
 0x14e   : > { %1712 = vperm.xlu1 %2073, %v1348_v18   ;;  %v1382_v39 = vsub.f32 1.0, %v1381_v58  ;;  %v1391_v35 = vand.u32 2147483648, %v3438_v61  ;;  %v1762_v26 = vmul.f32 %v3540_v31, %v1447_v59  ;;  %v1763_v30 = vmul.f32 %v3540_v31, %v1448_v36  ;;  %v1434_v31 = vld [vmem:[%s3382_s30 + $0x48] sm:$0xff]  ;;  %v1471_v10 = vld [vmem:[%s3382_s30 + $0x170] sm:$0xff]  ;;  %v1449_v18 = vld [vmem:[%s3382_s30 + $0xc0] sm:$0xff] }
 0x14f   : > { %v1414_v7 = vadd.f32 %v3514_v34, %v1413_v51  ;;  %v1742_v55 = vmul.f32 %v3532_v24, %v1427_v41  ;;  %v1743_v5 = vmul.f32 %v3532_v24, %v1428_v56  ;;  %vm1386_vm5 = vweird.f32 %v3501_v40  ;;  %v1472_v41 = vld [vmem:[%s3382_s30 + $0x178] sm:$0xff] }
 0x150   : > { %v1383_v53 = vmul.f32 %v3501_v40, %v1382_v39  ;;  %v1389_v21 = vand.u32 2147483647, %v3438_v61  ;;  %1853 = vst [vmem:[%s3431_s7 + $0xb0] sm:$0xff] %v1762_v26  ;;  %v1768_v13 = vmul.f32 %v3617_v62, %v1453_v32  ;;  %v1769_v11 = vmul.f32 %v3617_v62, %v1454_v54  ;;  %vm1387_vm6 = vmor %vm1385_vm3, %vm1386_vm5  ;;  %v1460_v61 = vld [vmem:[%s3382_s30 + $0x118] sm:$0xff]  ;;  %v1455_v54 = vld [vmem:[%s3382_s30 + $0xf0] sm:$0xff] }
 0x151   : > { %v1418_v24 = vsel %vm3726_vm4, %v3514_v34, %v1414_v7  ;;  %1854 = vst.msk [vmem:[%s3431_s7 + $0xb8] sm:$0xff] %vm1831_vm7, %v1763_v30  ;;  %v1748_v15 = vmul.f32 %v3591_v8, %v1433_v48  ;;  %v1392_v34 = vor.u32 1.1754944e-38, %v1391_v35  ;;  %v1749_v62 = vmul.f32 %v3591_v8, %v1434_v31  ;;  %v1437_v8 = vld [vmem:[%s3382_s30 + $0x60] sm:$0xff]  ;;  %v1458_v35 = vld [vmem:[%s3382_s30 + $0x108] sm:$0xff]  ;;  %v1464_v31 = vld [vmem:[%s3382_s30 + $0x138] sm:$0xff] }
 0x152   : > { %v1423_v6 = vsel %vm3716_vm2, %v1422_v60, %v1418_v24  ;;  %v1384_v46 = vadd.f32 %v3501_v40, %v1383_v53  ;;  %1833 = vst [vmem:[%s3431_s7 + $0x10] sm:$0xff] %v1742_v55  ;;  %vm1390_vm8 = vcmp.eq.f32.partialorder %v1389_v21, 8.507059e+37  ;;  %v1754_v37 = vmul.f32 %v3574_v4, %v1439_v0  ;;  %v1618_v9 = vpop.permute.xlu2 %1617  ;;  %v1456_v55 = vld [vmem:[%s3382_s30 + $0xf8] sm:$0xff]  ;;  %v1478_v53 = vld [vmem:[%s3382_s30 + $0x1a8] sm:$0xff] }
 0x153   : > { %1737 = vperm.xlu2 %2074, %v1423_v6   ;;  %1834 = vst.msk [vmem:[%s3431_s7 + $0x18] sm:$0xff] %vm1831_vm7, %v1743_v5  ;;  %v1755_v47 = vmul.f32 %v3574_v4, %v1440_v28  ;;  %v1775_v12 = vmul.f32 %v3703_v16, %v1460_v61  ;;  %v1752_v4 = vmul.f32 %v3667_v38, %v1437_v8  ;;  %v1598_v49 = vpop.permute.xlu0 %1597  ;;  %v1469_v28 = vld [vmem:[%s3382_s30 + $0x160] sm:$0xff]  ;;  %v1484_v8 = vld [vmem:[%s3382_s30 + $0x1d8] sm:$0xff] }
 0x154   : > { %v1388_v22 = vsel %vm1387_vm6, %v3501_v40, %v1384_v46  ;;  %1859 = vst [vmem:[%s3431_s7 + $0xe0] sm:$0xff] %v1768_v13  ;;  %v1774_v40 = vmul.f32 %v3703_v16, %v1459_v63  ;;  %v1753_v43 = vmul.f32 %v3667_v38, %v1438_v14  ;;  %v1760_v2 = vmul.f32 %v3655_v1, %v1445_v50  ;;  %v1452_v16 = vld [vmem:[%s3382_s30 + $0xd8] sm:$0xff]  ;;  %v1463_v13 = vld [vmem:[%s3382_s30 + $0x130] sm:$0xff]  ;;  %v1461_v46 = vld [vmem:[%s3382_s30 + $0x120] sm:$0xff] }
 0x155   : > { %v1393_v25 = vsel %vm1390_vm8, %v1392_v34, %v1388_v22  ;;  %1860 = vst.msk [vmem:[%s3431_s7 + $0xe8] sm:$0xff] %vm1831_vm7, %v1769_v11  ;;  %v1761_v45 = vmul.f32 %v3655_v1, %v1446_v33  ;;  %v1780_v38 = vmul.f32 %v1618_v9, %v1465_v19  ;;  %v1781_v3 = vmul.f32 %v1618_v9, %v1466_v44  ;;  %v1475_v9 = vld [vmem:[%s3382_s30 + $0x190] sm:$0xff] }
 0x156   : > { %1727 = vperm.xlu1 %2073, %v1393_v25   ;;  %1839 = vst [vmem:[%s3431_s7 + $0x40] sm:$0xff] %v1748_v15  ;;  %v1578_v23 = vpop.permute.xlu1 %1577  ;;  %v1758_v59 = vmul.f32 %v1563_v42, %v1443_v17  ;;  %v1759_v1 = vmul.f32 %v1563_v42, %v1444_v57  ;;  %v1766_v36 = vmul.f32 %v3738_v27, %v1451_v29  ;;  %v1462_v15 = vld [vmem:[%s3382_s30 + $0x128] sm:$0xff]  ;;  %v1467_v33 = vld [vmem:[%s3382_s30 + $0x150] sm:$0xff]  ;;  %v1489_v17 = vld [vmem:[%s3382_s30 + $0x200] sm:$0xff] }
 0x157   : > { %1840 = vst.msk [vmem:[%s3431_s7 + $0x48] sm:$0xff] %vm1831_vm7, %v1749_v62  ;;  %v1767_v56 = vmul.f32 %v3738_v27, %v1452_v16  ;;  %v1764_v39 = vmul.f32 %v1578_v23, %v1449_v18  ;;  %v1765_v26 = vmul.f32 %v1578_v23, %v1450_v20  ;;  %v1772_v30 = vmul.f32 %v1598_v49, %v1457_v52  ;;  %v1477_v27 = vld [vmem:[%s3382_s30 + $0x1a0] sm:$0xff]  ;;  %v1470_v62 = vld [vmem:[%s3382_s30 + $0x168] sm:$0xff]  ;;  %v1496_v20 = vld [vmem:[%s3382_s30 + $0x238] sm:$0xff] }
 0x158   : > { %1845 = vst [vmem:[%s3431_s7 + $0x70] sm:$0xff] %v1754_v37  ;;  %v1773_v5 = vmul.f32 %v1598_v49, %v1458_v35  ;;  %v1490_v23 = vld [vmem:[%s3382_s30 + $0x208] sm:$0xff]  ;;  %v1488_v35 = vld [vmem:[%s3382_s30 + $0x1f8] sm:$0xff] }
 0x159   : > { %1846 = vst.msk [vmem:[%s3431_s7 + $0x78] sm:$0xff] %vm1831_vm7, %v1755_v47  ;;  %v1483_v47 = vld [vmem:[%s3382_s30 + $0x1d0] sm:$0xff]  ;;  %v1482_v57 = vld [vmem:[%s3382_s30 + $0x1c8] sm:$0xff] }
 0x15a   : > { %1865 = vst [vmem:[%s3431_s7 + $0x110] sm:$0xff] %v1774_v40  ;;  %v1476_v40 = vld [vmem:[%s3382_s30 + $0x198] sm:$0xff] }
 0x15b   : > { %1866 = vst.msk [vmem:[%s3431_s7 + $0x118] sm:$0xff] %vm1831_vm7, %v1775_v12 }
 0x15c   : > { %1843 = vst [vmem:[%s3431_s7 + $0x60] sm:$0xff] %v1752_v4 }
 0x15d   : > { %1844 = vst.msk [vmem:[%s3431_s7 + $0x68] sm:$0xff] %vm1831_vm7, %v1753_v43  ;;  %v1468_v43 = vld [vmem:[%s3382_s30 + $0x158] sm:$0xff] }
 0x15e   : > { %1851 = vst [vmem:[%s3431_s7 + $0xa0] sm:$0xff] %v1760_v2  ;;  %v1633_v58 = vpop.permute.xlu2 %1632 }
 0x15f   : > { %1852 = vst.msk [vmem:[%s3431_s7 + $0xa8] sm:$0xff] %vm1831_vm7, %v1761_v45  ;;  %v1786_v51 = vmul.f32 %v1633_v58, %v1471_v10  ;;  %v1787_v32 = vmul.f32 %v1633_v58, %v1472_v41  ;;  %v1474_v10 = vld [vmem:[%s3382_s30 + $0x188] sm:$0xff] }
 0x160   : > { %1871 = vst [vmem:[%s3431_s7 + $0x140] sm:$0xff] %v1780_v38  ;;  %v1613_v60 = vpop.permute.xlu0 %1612  ;;  %v1481_v38 = vld [vmem:[%s3382_s30 + $0x1c0] sm:$0xff] }
 0x161   : > { %1872 = vst.msk [vmem:[%s3431_s7 + $0x148] sm:$0xff] %vm1831_vm7, %v1781_v3  ;;  %v1778_v42 = vmul.f32 %v1613_v60, %v1463_v13  ;;  %v1779_v6 = vmul.f32 %v1613_v60, %v1464_v31 }
 0x162   : > { %1849 = vst [vmem:[%s3431_s7 + $0x90] sm:$0xff] %v1758_v59 }
 0x163   : > { %1850 = vst.msk [vmem:[%s3431_s7 + $0x98] sm:$0xff] %vm1831_vm7, %v1759_v1  ;;  %v1593_v7 = vpop.permute.xlu1 %1592  ;;  %v1473_v1 = vld [vmem:[%s3382_s30 + $0x180] sm:$0xff] }
 0x164   : > { %1857 = vst [vmem:[%s3431_s7 + $0xd0] sm:$0xff] %v1766_v36  ;;  %v1770_v48 = vmul.f32 %v1593_v7, %v1455_v54  ;;  %v1771_v21 = vmul.f32 %v1593_v7, %v1456_v55  ;;  %v1480_v54 = vld [vmem:[%s3382_s30 + $0x1b8] sm:$0xff] }
 0x165   : > { %1858 = vst.msk [vmem:[%s3431_s7 + $0xd8] sm:$0xff] %vm1831_vm7, %v1767_v56 }
 0x166   : > { %1877 = vst [vmem:[%s3431_s7 + $0x170] sm:$0xff] %v1786_v51  ;;  %v1495_v51 = vld [vmem:[%s3382_s30 + $0x230] sm:$0xff] }
 0x167   : > { %1878 = vst.msk [vmem:[%s3431_s7 + $0x178] sm:$0xff] %vm1831_vm7, %v1787_v32 }
 0x168   : > { %1855 = vst [vmem:[%s3431_s7 + $0xc0] sm:$0xff] %v1764_v39  ;;  %v1487_v39 = vld [vmem:[%s3382_s30 + $0x1f0] sm:$0xff] }
 0x169   : > { %1856 = vst.msk [vmem:[%s3431_s7 + $0xc8] sm:$0xff] %vm1831_vm7, %v1765_v26  ;;  %v1479_v26 = vld [vmem:[%s3382_s30 + $0x1b0] sm:$0xff] }
 0x16a   : > { %1863 = vst [vmem:[%s3431_s7 + $0x100] sm:$0xff] %v1772_v30 }
 0x16b   : > { %1864 = vst.msk [vmem:[%s3431_s7 + $0x108] sm:$0xff] %vm1831_vm7, %v1773_v5 }
 0x16c   : > { %v1648_v24 = vpop.permute.xlu2 %1647  ;;  %1861 = vst [vmem:[%s3431_s7 + $0xf0] sm:$0xff] %v1770_v48 }
 0x16d   : > { %v1792_v11 = vmul.f32 %v1648_v24, %v1477_v27  ;;  %v1793_v0 = vmul.f32 %v1648_v24, %v1478_v53  ;;  %1862 = vst.msk [vmem:[%s3431_s7 + $0xf8] sm:$0xff] %vm1831_vm7, %v1771_v21  ;;  %v1628_v34 = vpop.permute.xlu0 %1627  ;;  %v1501_v53 = vld [vmem:[%s3382_s30 + $0x260] sm:$0xff]  ;;  %v1502_v21 = vld [vmem:[%s3382_s30 + $0x268] sm:$0xff] }
 0x16e   : > { %1869 = vst [vmem:[%s3431_s7 + $0x130] sm:$0xff] %v1778_v42  ;;  %v1784_v61 = vmul.f32 %v1628_v34, %v1469_v28  ;;  %v1785_v25 = vmul.f32 %v1628_v34, %v1470_v62  ;;  %v1485_v42 = vld [vmem:[%s3382_s30 + $0x1e0] sm:$0xff]  ;;  %v1486_v28 = vld [vmem:[%s3382_s30 + $0x1e8] sm:$0xff] }
 0x16f   : > { %1883 = vst [vmem:[%s3431_s7 + $0x1a0] sm:$0xff] %v1792_v11  ;;  %v1608_v63 = vpop.permute.xlu1 %1607  ;;  %v1493_v11 = vld [vmem:[%s3382_s30 + $0x220] sm:$0xff] }
 0x170   : > { %1884 = vst.msk [vmem:[%s3431_s7 + $0x1a8] sm:$0xff] %vm1831_vm7, %v1793_v0  ;;  %v1776_v22 = vmul.f32 %v1608_v63, %v1461_v46  ;;  %v1777_v37 = vmul.f32 %v1608_v63, %v1462_v15  ;;  %v1494_v0 = vld [vmem:[%s3382_s30 + $0x228] sm:$0xff]  ;;  %v1507_v46 = vld [vmem:[%s3382_s30 + $0x290] sm:$0xff]  ;;  %v1508_v15 = vld [vmem:[%s3382_s30 + $0x298] sm:$0xff] }
 0x171   : > { %1870 = vst.msk [vmem:[%s3431_s7 + $0x138] sm:$0xff] %vm1831_vm7, %v1779_v6 }
 0x172   : > { %1867 = vst [vmem:[%s3431_s7 + $0x120] sm:$0xff] %v1776_v22 }
 0x173   : > { %1868 = vst.msk [vmem:[%s3431_s7 + $0x128] sm:$0xff] %vm1831_vm7, %v1777_v37 }
 0x174   : > { %1875 = vst [vmem:[%s3431_s7 + $0x160] sm:$0xff] %v1784_v61 }
 0x175   : > { %1876 = vst.msk [vmem:[%s3431_s7 + $0x168] sm:$0xff] %vm1831_vm7, %v1785_v25 }
 0x178   : > { %v1663_v14 = vpop.permute.xlu2 %1662 }
 0x179   : > { %v1798_v12 = vmul.f32 %v1663_v14, %v1483_v47  ;;  %v1799_v50 = vmul.f32 %v1663_v14, %v1484_v8  ;;  %v1499_v8 = vld [vmem:[%s3382_s30 + $0x250] sm:$0xff]  ;;  %v1514_v14 = vld [vmem:[%s3382_s30 + $0x2c8] sm:$0xff] }
 0x17a   : > { %v1643_v4 = vpop.permute.xlu0 %1642 }
 0x17b   : > { %v1790_v19 = vmul.f32 %v1643_v4, %v1475_v9  ;;  %v1791_v49 = vmul.f32 %v1643_v4, %v1476_v40  ;;  %1889 = vst [vmem:[%s3431_s7 + $0x1d0] sm:$0xff] %v1798_v12  ;;  %v1500_v9 = vld [vmem:[%s3382_s30 + $0x258] sm:$0xff]  ;;  %v1513_v40 = vld [vmem:[%s3382_s30 + $0x2c0] sm:$0xff]  ;;  %v1491_v12 = vld [vmem:[%s3382_s30 + $0x210] sm:$0xff] }
 0x17c   : > { %1890 = vst.msk [vmem:[%s3431_s7 + $0x1d8] sm:$0xff] %vm1831_vm7, %v1799_v50  ;;  %v1623_v2 = vpop.permute.xlu1 %1622  ;;  %v1492_v4 = vld [vmem:[%s3382_s30 + $0x218] sm:$0xff] }
 0x17d   : > { %v1782_v44 = vmul.f32 %v1623_v2, %v1467_v33  ;;  %v1783_v45 = vmul.f32 %v1623_v2, %v1468_v43  ;;  %1881 = vst [vmem:[%s3431_s7 + $0x190] sm:$0xff] %v1790_v19 }
 0x17e   : > { %1882 = vst.msk [vmem:[%s3431_s7 + $0x198] sm:$0xff] %vm1831_vm7, %v1791_v49 }
 0x17f   : > { %1873 = vst [vmem:[%s3431_s7 + $0x150] sm:$0xff] %v1782_v44 }
 0x180   : > { %1874 = vst.msk [vmem:[%s3431_s7 + $0x158] sm:$0xff] %vm1831_vm7, %v1783_v45 }
 0x185   : > { %v1678_v3 = vpop.permute.xlu2 %1677 }
 0x186   : > { %v1804_v29 = vmul.f32 %v1678_v3, %v1489_v17  ;;  %v1805_v59 = vmul.f32 %v1678_v3, %v1490_v23  ;;  %v1658_v16 = vpop.permute.xlu0 %1657  ;;  %v1505_v23 = vld [vmem:[%s3382_s30 + $0x280] sm:$0xff] }
 0x187   : > { %v1796_v58 = vmul.f32 %v1658_v16, %v1481_v38  ;;  %v1797_v36 = vmul.f32 %v1658_v16, %v1482_v57  ;;  %v1506_v38 = vld [vmem:[%s3382_s30 + $0x288] sm:$0xff]  ;;  %v1497_v3 = vld [vmem:[%s3382_s30 + $0x240] sm:$0xff] }
 0x188   : > { %1895 = vst [vmem:[%s3431_s7 + $0x200] sm:$0xff] %v1804_v29  ;;  %v1498_v29 = vld [vmem:[%s3382_s30 + $0x248] sm:$0xff] }
 0x189   : > { %1896 = vst.msk [vmem:[%s3431_s7 + $0x208] sm:$0xff] %vm1831_vm7, %v1805_v59  ;;  %v1638_v41 = vpop.permute.xlu1 %1637 }
 0x18a   : > { %v1788_v56 = vmul.f32 %v1638_v41, %v1473_v1  ;;  %v1789_v18 = vmul.f32 %v1638_v41, %v1474_v10  ;;  %1887 = vst [vmem:[%s3431_s7 + $0x1c0] sm:$0xff] %v1796_v58  ;;  %v1512_v41 = vld [vmem:[%s3382_s30 + $0x2b8] sm:$0xff] }
 0x18b   : > { %1888 = vst.msk [vmem:[%s3431_s7 + $0x1c8] sm:$0xff] %vm1831_vm7, %v1797_v36  ;;  %v1511_v36 = vld [vmem:[%s3382_s30 + $0x2b0] sm:$0xff] }
 0x18c   : > { %1879 = vst [vmem:[%s3431_s7 + $0x180] sm:$0xff] %v1788_v56  ;;  %v1503_v56 = vld [vmem:[%s3382_s30 + $0x270] sm:$0xff] }
 0x18d   : > { %1880 = vst.msk [vmem:[%s3431_s7 + $0x188] sm:$0xff] %vm1831_vm7, %v1789_v18  ;;  %v1504_v18 = vld [vmem:[%s3382_s30 + $0x278] sm:$0xff] }
 0x190   : > { %v1693_v32 = vpop.permute.xlu2 %1692 }
 0x191   : > { %v1810_v52 = vmul.f32 %v1693_v32, %v1495_v51  ;;  %v1811_v60 = vmul.f32 %v1693_v32, %v1496_v20 }
 0x193   : > { %1901 = vst [vmem:[%s3431_s7 + $0x230] sm:$0xff] %v1810_v52  ;;  %v1673_v7 = vpop.permute.xlu0 %1672 }
 0x194   : > { %1902 = vst.msk [vmem:[%s3431_s7 + $0x238] sm:$0xff] %vm1831_vm7, %v1811_v60  ;;  %v1802_v30 = vmul.f32 %v1673_v7, %v1487_v39  ;;  %v1803_v55 = vmul.f32 %v1673_v7, %v1488_v35  ;;  %v1509_v35 = vld [vmem:[%s3382_s30 + $0x2a0] sm:$0xff] }
 0x196   : > { %v1653_v5 = vpop.permute.xlu1 %1652  ;;  %1893 = vst [vmem:[%s3431_s7 + $0x1f0] sm:$0xff] %v1802_v30 }
 0x197   : > { %v1794_v48 = vmul.f32 %v1653_v5, %v1479_v26  ;;  %v1795_v27 = vmul.f32 %v1653_v5, %v1480_v54  ;;  %1894 = vst.msk [vmem:[%s3431_s7 + $0x1f8] sm:$0xff] %vm1831_vm7, %v1803_v55  ;;  %v1510_v26 = vld [vmem:[%s3382_s30 + $0x2a8] sm:$0xff] }
 0x199   : > { %1885 = vst [vmem:[%s3431_s7 + $0x1b0] sm:$0xff] %v1794_v48 }
 0x19a   : > { %1886 = vst.msk [vmem:[%s3431_s7 + $0x1b8] sm:$0xff] %vm1831_vm7, %v1795_v27  ;;  %v1708_v13 = vpop.permute.xlu2 %1707 }
 0x19b   : > { %v1816_v31 = vmul.f32 %v1708_v13, %v1501_v53  ;;  %v1817_v24 = vmul.f32 %v1708_v13, %v1502_v21 }
 0x19d   : > { %1907 = vst [vmem:[%s3431_s7 + $0x260] sm:$0xff] %v1816_v31 }
 0x19e   : > { %1908 = vst.msk [vmem:[%s3431_s7 + $0x268] sm:$0xff] %vm1831_vm7, %v1817_v24 }
 0x1a0   : > { %v1688_v6 = vpop.permute.xlu0 %1687 }
 0x1a1   : > { %v1808_v34 = vmul.f32 %v1688_v6, %v1493_v11  ;;  %v1809_v62 = vmul.f32 %v1688_v6, %v1494_v0 }
 0x1a2   : > { %v1668_v63 = vpop.permute.xlu1 %1667 }
 0x1a3   : > { %v1723_v22 = vpop.permute.xlu2 %1722  ;;  %v1800_v37 = vmul.f32 %v1668_v63, %v1485_v42  ;;  %1899 = vst [vmem:[%s3431_s7 + $0x220] sm:$0xff] %v1808_v34  ;;  %v1801_v47 = vmul.f32 %v1668_v63, %v1486_v28 }
 0x1a4   : > { %v1822_v61 = vmul.f32 %v1723_v22, %v1507_v46  ;;  %v1823_v25 = vmul.f32 %v1723_v22, %v1508_v15  ;;  %1900 = vst.msk [vmem:[%s3431_s7 + $0x228] sm:$0xff] %vm1831_vm7, %v1809_v62 }
 0x1a5   : > { %1891 = vst [vmem:[%s3431_s7 + $0x1e0] sm:$0xff] %v1800_v37 }
 0x1a6   : > { %1913 = vst [vmem:[%s3431_s7 + $0x290] sm:$0xff] %v1822_v61 }
 0x1a7   : > { %1914 = vst.msk [vmem:[%s3431_s7 + $0x298] sm:$0xff] %vm1831_vm7, %v1823_v25 }
 0x1a8   : > { %1892 = vst.msk [vmem:[%s3431_s7 + $0x1e8] sm:$0xff] %vm1831_vm7, %v1801_v47 }
 0x1ab   : > { %v1703_v50 = vpop.permute.xlu0 %1702 }
 0x1ac   : > { %v1814_v33 = vmul.f32 %v1703_v50, %v1499_v8  ;;  %v1815_v43 = vmul.f32 %v1703_v50, %v1500_v9 }
 0x1ad   : > { %v1738_v19 = vpop.permute.xlu2 %1737  ;;  %v1683_v49 = vpop.permute.xlu1 %1682 }
 0x1ae   : > { %v1828_v2 = vmul.f32 %v1738_v19, %v1513_v40  ;;  %v1829_v44 = vmul.f32 %v1738_v19, %v1514_v14  ;;  %v1806_v45 = vmul.f32 %v1683_v49, %v1491_v12  ;;  %1905 = vst [vmem:[%s3431_s7 + $0x250] sm:$0xff] %v1814_v33  ;;  %v1807_v17 = vmul.f32 %v1683_v49, %v1492_v4 }
 0x1af   : > { %1906 = vst.msk [vmem:[%s3431_s7 + $0x258] sm:$0xff] %vm1831_vm7, %v1815_v43 }
 0x1b0   : > { %1919 = vst [vmem:[%s3431_s7 + $0x2c0] sm:$0xff] %v1828_v2 }
 0x1b1   : > { %1920 = vst.msk [vmem:[%s3431_s7 + $0x2c8] sm:$0xff] %vm1831_vm7, %v1829_v44 }
 0x1b2   : > { %1897 = vst [vmem:[%s3431_s7 + $0x210] sm:$0xff] %v1806_v45 }
 0x1b3   : > { %1898 = vst.msk [vmem:[%s3431_s7 + $0x218] sm:$0xff] %vm1831_vm7, %v1807_v17 }
 0x1b4   : > { %v1718_v57 = vpop.permute.xlu0 %1717 }
 0x1b5   : > { %v1820_v59 = vmul.f32 %v1718_v57, %v1505_v23  ;;  %v1821_v16 = vmul.f32 %v1718_v57, %v1506_v38 }
 0x1b7   : > { %v1698_v1 = vpop.permute.xlu1 %1697  ;;  %1911 = vst [vmem:[%s3431_s7 + $0x280] sm:$0xff] %v1820_v59 }
 0x1b8   : > { %v1812_v10 = vmul.f32 %v1698_v1, %v1497_v3  ;;  %v1813_v58 = vmul.f32 %v1698_v1, %v1498_v29  ;;  %1912 = vst.msk [vmem:[%s3431_s7 + $0x288] sm:$0xff] %vm1831_vm7, %v1821_v16 }
 0x1ba   : > { %1903 = vst [vmem:[%s3431_s7 + $0x240] sm:$0xff] %v1812_v10 }
 0x1bb   : > { %1904 = vst.msk [vmem:[%s3431_s7 + $0x248] sm:$0xff] %vm1831_vm7, %v1813_v58 }
 0x1be   : > { %v1733_v51 = vpop.permute.xlu0 %1732 }
 0x1bf   : > { %v1826_v20 = vmul.f32 %v1733_v51, %v1511_v36  ;;  %v1827_v32 = vmul.f32 %v1733_v51, %v1512_v41 }
 0x1c0   : > { %v1713_v52 = vpop.permute.xlu1 %1712 }
 0x1c1   : > { %v1818_v60 = vmul.f32 %v1713_v52, %v1503_v56  ;;  %v1819_v39 = vmul.f32 %v1713_v52, %v1504_v18  ;;  %1917 = vst [vmem:[%s3431_s7 + $0x2b0] sm:$0xff] %v1826_v20 }
 0x1c2   : > { %1918 = vst.msk [vmem:[%s3431_s7 + $0x2b8] sm:$0xff] %vm1831_vm7, %v1827_v32 }
 0x1c3   : > { %1909 = vst [vmem:[%s3431_s7 + $0x270] sm:$0xff] %v1818_v60 }
 0x1c4   : > { %1910 = vst.msk [vmem:[%s3431_s7 + $0x278] sm:$0xff] %vm1831_vm7, %v1819_v39 }
 0x1c8   : > { %v1728_v54 = vpop.permute.xlu1 %1727 }
 0x1c9   : > { %v1824_v7 = vmul.f32 %v1728_v54, %v1509_v35  ;;  %v1825_v30 = vmul.f32 %v1728_v54, %v1510_v26 }
 0x1cb   : > { %1915 = vst [vmem:[%s3431_s7 + $0x2a0] sm:$0xff] %v1824_v7 }
 0x1cc   : > { %1916 = vst.msk [vmem:[%s3431_s7 + $0x2a8] sm:$0xff] %vm1831_vm7, %v1825_v30 }
 0x1cd PF: > { %s14_s15 = sadd.s32 1, %s2262_s15  }
 0x1ce   : > { %p11_p4 = scmp.ge.s32.totalorder %s14_s15, 4  }
 0x1d0   :  { %13 = sbr.rel (!%p11_p4) target bundleno = 1 (0x1), region = 72 }

</bundles_post_ra>
